<compile_context>
chip_gen: v6e
topology: v6e:2x2x1
jax: 0.10.0
libtpu: 0.0.40
codegen_flags: <defaults>
</compile_context>

<pallas_src>
import functools
import math

import jax
import jax.numpy as jnp
from jax.experimental import pallas as pl
from jax.experimental.pallas import tpu as pltpu


# 32 MiB scoped VMEM: raises v5e's 16 MiB default, matches v6e/v7x defaults, and keeps
# generous headroom under v7x's 64 MiB physical VMEM for the tile sizes chosen below.
_VMEM_LIMIT = 32 * 1024 * 1024


def _cparams(semantics):
    return pltpu.CompilerParams(dimension_semantics=semantics,
                                vmem_limit_bytes=_VMEM_LIMIT)


def _pick_tile(dim, preferred, align):
    """Largest divisor of `dim` that is a multiple of `align` and <= `preferred`, else `dim`.

    Returning `dim` keeps the (8,128) BlockSpec rule satisfied (block == full array dim)."""
    if dim <= preferred:
        return dim
    t = (preferred // align) * align
    while t >= align:
        if dim % t == 0:
            return t
        t -= align
    return dim


# ----------------------------- in-kernel helpers -----------------------------

def _erf_approx(x):
    # Abramowitz & Stegun 7.1.26 (max abs err ~1.5e-7): matches torch's exact
    # erf-based F.gelu to fp32 precision using only Mosaic-supported ops.
    p = 0.3275911
    a1, a2, a3, a4, a5 = 0.254829592, -0.284496736, 1.421413741, -1.453152027, 1.061405429
    ax = jnp.abs(x)
    t = 1.0 / (1.0 + p * ax)
    poly = ((((a5 * t + a4) * t + a3) * t + a2) * t + a1) * t
    y = 1.0 - poly * jnp.exp(-ax * ax)
    return jnp.where(x < 0, -y, y)


def _gelu_exact(x):
    return 0.5 * x * (1.0 + _erf_approx(x * 0.7071067811865476))


# --------------------------------- kernels -----------------------------------

def _linear_kernel(x_ref, w_ref, b_ref, o_ref, acc_ref, *, gelu):
    k = pl.program_id(2)

    @pl.when(k == 0)
    def _():
        acc_ref[...] = jnp.zeros_like(acc_ref)

    # bf16 MXU inputs, f32 accumulation.
    acc_ref[...] += jnp.dot(x_ref[...].astype(jnp.bfloat16), w_ref[...],
                            preferred_element_type=jnp.float32)

    @pl.when(k == pl.num_programs(2) - 1)
    def _():
        y = acc_ref[...] + b_ref[...]
        if gelu:
            y = _gelu_exact(y)            # f32 elementwise epilogue
        o_ref[...] = y


def linear(x, w, b, gelu=False):
    # x: (M, K) f32, w: (K, N) bf16, b: (1, N) f32  ->  (M, N) f32
    M, K = x.shape
    N = w.shape[1]
    tm = _pick_tile(M, 256, 8)
    tn = _pick_tile(N, 512, 128)          # lane-dense output tiles (multiples of 128 when possible)
    tk = _pick_tile(K, 512, 128)
    return pl.pallas_call(
        functools.partial(_linear_kernel, gelu=gelu),
        out_shape=jax.ShapeDtypeStruct((M, N), jnp.float32),
        grid=(M // tm, N // tn, K // tk),
        in_specs=[pl.BlockSpec((tm, tk), lambda i, j, k: (i, k)),
                  pl.BlockSpec((tk, tn), lambda i, j, k: (k, j)),
                  pl.BlockSpec((1, tn), lambda i, j, k: (0, j))],
        out_specs=pl.BlockSpec((tm, tn), lambda i, j, k: (i, j)),
        scratch_shapes=[pltpu.VMEM((tm, tn), jnp.float32)],
        compiler_params=_cparams(("parallel", "parallel", "arbitrary")),
    )(x, w, b)


def _linear_add_ln_kernel(x_ref, w_ref, b_ref, r_ref, g_ref, bb_ref, o_ref, acc_ref, *, eps):
    k = pl.program_id(1)

    @pl.when(k == 0)
    def _():
        acc_ref[...] = jnp.zeros_like(acc_ref)

    acc_ref[...] += jnp.dot(x_ref[...].astype(jnp.bfloat16), w_ref[...],
                            preferred_element_type=jnp.float32)

    @pl.when(k == pl.num_programs(1) - 1)
    def _():
        # fused epilogue: bias + residual add + LayerNorm, all in f32.
        y = acc_ref[...] + b_ref[...] + r_ref[...]
        mean = jnp.mean(y, axis=-1, keepdims=True)
        var = jnp.mean((y - mean) ** 2, axis=-1, keepdims=True)
        o_ref[...] = (y - mean) * jax.lax.rsqrt(var + eps) * g_ref[...] + bb_ref[...]


def linear_add_ln(x, w, b, res, gamma, beta, eps=1e-5):
    # out = LayerNorm((x @ w + b) + res).  Full N (== E) per tile so LN sees a whole row.
    M, K = x.shape
    N = w.shape[1]
    tm = _pick_tile(M, 256, 8)
    tk = _pick_tile(K, 512, 128)
    return pl.pallas_call(
        functools.partial(_linear_add_ln_kernel, eps=eps),
        out_shape=jax.ShapeDtypeStruct((M, N), jnp.float32),
        grid=(M // tm, K // tk),
        in_specs=[pl.BlockSpec((tm, tk), lambda i, k: (i, k)),
                  pl.BlockSpec((tk, N), lambda i, k: (k, 0)),
                  pl.BlockSpec((1, N), lambda i, k: (0, 0)),
                  pl.BlockSpec((tm, N), lambda i, k: (i, 0)),
                  pl.BlockSpec((1, N), lambda i, k: (0, 0)),
                  pl.BlockSpec((1, N), lambda i, k: (0, 0))],
        out_specs=pl.BlockSpec((tm, N), lambda i, k: (i, 0)),
        scratch_shapes=[pltpu.VMEM((tm, N), jnp.float32)],
        compiler_params=_cparams(("parallel", "arbitrary")),
    )(x, w, b, res, gamma, beta)


def _ln_kernel(x_ref, g_ref, b_ref, o_ref, *, eps):
    y = x_ref[...]
    mean = jnp.mean(y, axis=-1, keepdims=True)
    var = jnp.mean((y - mean) ** 2, axis=-1, keepdims=True)
    o_ref[...] = (y - mean) * jax.lax.rsqrt(var + eps) * g_ref[...] + b_ref[...]


def layernorm(x, gamma, beta, eps=1e-5):
    # LayerNorm only (no zero residual buffer) — used for the final norm.
    M, E = x.shape
    tm = _pick_tile(M, 512, 8)
    return pl.pallas_call(
        functools.partial(_ln_kernel, eps=eps),
        out_shape=jax.ShapeDtypeStruct((M, E), jnp.float32),
        grid=(M // tm,),
        in_specs=[pl.BlockSpec((tm, E), lambda i: (i, 0)),
                  pl.BlockSpec((1, E), lambda i: (0, 0)),
                  pl.BlockSpec((1, E), lambda i: (0, 0))],
        out_specs=pl.BlockSpec((tm, E), lambda i: (i, 0)),
        compiler_params=_cparams(("parallel",)),
    )(x, gamma, beta)


def _matmul_nt_kernel(x_ref, w_ref, o_ref, acc_ref):
    k = pl.program_id(2)

    @pl.when(k == 0)
    def _():
        acc_ref[...] = jnp.zeros_like(acc_ref)

    # contract last dims of both operands: x (tm, tk) @ w (tn, tk)^T, no wrapper transpose.
    acc_ref[...] += jax.lax.dot_general(
        x_ref[...].astype(jnp.bfloat16), w_ref[...],
        (((1,), (1,)), ((), ())), preferred_element_type=jnp.float32)

    @pl.when(k == pl.num_programs(2) - 1)
    def _():
        o_ref[...] = acc_ref[...]


def matmul_nt(x, w):
    # x: (M, K) f32, w: (N, K) bf16  ->  (M, N) f32   (tied LM head: logits = x @ wte^T)
    M, K = x.shape
    N = w.shape[0]
    tm = _pick_tile(M, 256, 8)
    tn = _pick_tile(N, 512, 128)
    tk = _pick_tile(K, 512, 128)
    return pl.pallas_call(
        _matmul_nt_kernel,
        out_shape=jax.ShapeDtypeStruct((M, N), jnp.float32),
        grid=(M // tm, N // tn, K // tk),
        in_specs=[pl.BlockSpec((tm, tk), lambda i, j, k: (i, k)),
                  pl.BlockSpec((tn, tk), lambda i, j, k: (j, k))],
        out_specs=pl.BlockSpec((tm, tn), lambda i, j, k: (i, j)),
        scratch_shapes=[pltpu.VMEM((tm, tn), jnp.float32)],
        compiler_params=_cparams(("parallel", "parallel", "arbitrary")),
    )(x, w)


def _attn_kernel(q_ref, k_ref, v_ref, o_ref, *, scale):
    # One attention-batch element per grid step; all heads batched in one einsum.
    q = (q_ref[0] * scale).astype(jnp.bfloat16)   # fold scale into q (L*hd elems, not L*L)
    k = k_ref[0].astype(jnp.bfloat16)
    v = v_ref[0].astype(jnp.bfloat16)
    s = jnp.einsum('hqd,hkd->hqk', q, k, preferred_element_type=jnp.float32)
    s = s - jnp.max(s, axis=-1, keepdims=True)
    p = jnp.exp(s)
    p = p * pl.reciprocal(jnp.sum(p, axis=-1, keepdims=True), approx=True)  # EUP reciprocal
    o_ref[0] = jnp.einsum('hqk,hkd->hqd', p.astype(jnp.bfloat16), v,
                          preferred_element_type=jnp.float32)


def attention(q, k, v):
    # q: (N, H, L, hd), k/v: (N, H, Lk, hd) — one grid step per attention-batch element n.
    N, H, L, hd = q.shape
    Lk = k.shape[2]
    scale = 1.0 / math.sqrt(hd)
    return pl.pallas_call(
        functools.partial(_attn_kernel, scale=scale),
        out_shape=jax.ShapeDtypeStruct((N, H, L, hd), jnp.float32),
        grid=(N,),
        in_specs=[pl.BlockSpec((1, H, L, hd), lambda n: (n, 0, 0, 0)),
                  pl.BlockSpec((1, H, Lk, hd), lambda n: (n, 0, 0, 0)),
                  pl.BlockSpec((1, H, Lk, hd), lambda n: (n, 0, 0, 0))],
        out_specs=pl.BlockSpec((1, H, L, hd), lambda n: (n, 0, 0, 0)),
        compiler_params=_cparams(("parallel",)),
    )(q, k, v)


# ------------------------------ model assembly -------------------------------

def _split_heads(t, Lx, N, H, hd):
    # (Lx*N, E) -> (N, H, Lx, hd); head h takes channels [h*hd:(h+1)*hd] (PyTorch MHA order)
    return t.reshape(Lx, N, H, hd).transpose(1, 2, 0, 3)


def _merge_heads(o, L, N, E):
    # (N, H, L, hd) -> (L*N, E)
    return o.transpose(2, 0, 1, 3).reshape(L * N, E)


def self_attention_heads(x, p, num_heads):
    # Fused QKV projection (x read once); returns merged heads *before* out_proj.
    L, N, E = x.shape
    hd = E // num_heads
    qkv = linear(x.reshape(L * N, E), p["wqkv"], p["bqkv"])           # (L*N, 3E)
    q, k, v = qkv[:, :E], qkv[:, E:2 * E], qkv[:, 2 * E:]
    o = attention(_split_heads(q, L, N, num_heads, hd),
                  _split_heads(k, L, N, num_heads, hd),
                  _split_heads(v, L, N, num_heads, hd))
    return _merge_heads(o, L, N, E)


def cross_attention_heads(x_q, x_kv, p, num_heads):
    # Fused K/V projection of the memory; returns merged heads *before* out_proj.
    L, N, E = x_q.shape
    Lk = x_kv.shape[0]
    hd = E // num_heads
    q = linear(x_q.reshape(L * N, E), p["wq"], p["bq"])               # (L*N, E)
    kv = linear(x_kv.reshape(Lk * N, E), p["wkv"], p["bkv"])          # (Lk*N, 2E)
    k, v = kv[:, :E], kv[:, E:]
    o = attention(_split_heads(q, L, N, num_heads, hd),
                  _split_heads(k, Lk, N, num_heads, hd),
                  _split_heads(v, Lk, N, num_heads, hd))
    return _merge_heads(o, L, N, E)


def decoder_layer(x, lp, num_heads):
    # nn.TransformerDecoderLayer, norm_first=False, activation='gelu', eval mode.
    L, N, E = x.shape
    M = L * N
    memory = x  # layer is called as layer(x, x): memory == layer input
    x_flat = x.reshape(M, E)

    # self-attention: out_proj fused with residual-add + LayerNorm1
    sa = self_attention_heads(x, lp["self_attn"], num_heads)
    x_flat = linear_add_ln(sa, lp["self_attn"]["wo"], lp["self_attn"]["bo"],
                           x_flat, lp["ln1_g"], lp["ln1_b"])

    # cross-attention (memory = layer input): out_proj fused with add + LayerNorm2
    ca = cross_attention_heads(x_flat.reshape(L, N, E), memory, lp["cross_attn"], num_heads)
    x_flat = linear_add_ln(ca, lp["cross_attn"]["wo"], lp["cross_attn"]["bo"],
                           x_flat, lp["ln2_g"], lp["ln2_b"])

    # feed-forward: w1 + exact GELU, then w2 fused with add + LayerNorm3
    h = linear(x_flat, lp["w1"], lp["b1"], gelu=True)
    x_flat = linear_add_ln(h, lp["w2"], lp["b2"], x_flat, lp["ln3_g"], lp["ln3_b"])
    return x_flat.reshape(L, N, E)


def decoder_only_transformer(tokens, params, num_heads):
    B, T = tokens.shape
    E = params["wpe"].shape[1]
    # token + position embeddings (gather stays in JAX glue)
    x = (jnp.take(params["wte"], tokens, axis=0).astype(jnp.float32)
         + params["wpe"][:T][None, :, :])
    for lp in params["layers"]:
        x = decoder_layer(x, lp, num_heads)
    M = B * T
    x2 = layernorm(x.reshape(M, E), params["lnf_g"], params["lnf_b"])
    # tied LM head: contract against wte (V, E) inside the kernel — no wte.T copy in HBM.
    logits = matmul_nt(x2, params["wte"])
    return logits.reshape(B, T, -1)


# ------------------------------ parameter init --------------------------------

def init_params(key, *, vocab_size, embed_dim, num_heads, num_layers, block_size):
    std = 0.02
    E, F = embed_dim, 4 * embed_dim
    ctr = [0]

    def nrm(shape, dtype=jnp.bfloat16):
        ctr[0] += 1
        k = jax.random.fold_in(key, ctr[0])
        return (std * jax.random.normal(k, shape, dtype=jnp.float32)).astype(dtype)

    def zeros(shape):
        return jnp.zeros(shape, jnp.float32)

    def ones(shape):
        return jnp.ones(shape, jnp.float32)

    params = {
        "wte": nrm((vocab_size, E)),               # bf16; token embedding == tied head weight
        "wpe": nrm((block_size, E), jnp.float32),
        "lnf_g": ones((1, E)), "lnf_b": zeros((1, E)),
        "layers": [],
    }
    for _ in range(num_layers):
        params["layers"].append({
            # fused [Wq|Wk|Wv] for self-attention, fused [Wk|Wv] for cross-attention
            "self_attn": {"wqkv": nrm((E, 3 * E)), "bqkv": zeros((1, 3 * E)),
                          "wo": nrm((E, E)), "bo": zeros((1, E))},
            "cross_attn": {"wq": nrm((E, E)), "bq": zeros((1, E)),
                           "wkv": nrm((E, 2 * E)), "bkv": zeros((1, 2 * E)),
                           "wo": nrm((E, E)), "bo": zeros((1, E))},
            "w1": nrm((E, F)), "b1": zeros((1, F)),
            "w2": nrm((F, E)), "b2": zeros((1, E)),
            "ln1_g": ones((1, E)), "ln1_b": zeros((1, E)),
            "ln2_g": ones((1, E)), "ln2_b": zeros((1, E)),
            "ln3_g": ones((1, E)), "ln3_b": zeros((1, E)),
        })
    return params


# ----------------------------------- main --------------------------------------

if __name__ == "__main__":
    VOCAB, EMBED, HEADS, LAYERS, BLOCK = 128, 64, 4, 2, 16
    B, T = 2, 8

    key = jax.random.PRNGKey(0)
    pkey, tkey = jax.random.split(key)
    params = init_params(pkey, vocab_size=VOCAB, embed_dim=EMBED,
                         num_heads=HEADS, num_layers=LAYERS, block_size=BLOCK)
    tokens = jax.random.randint(tkey, (B, T), 0, VOCAB, dtype=jnp.int32)

    fwd = jax.jit(functools.partial(decoder_only_transformer, num_heads=HEADS))
    logits = jax.block_until_ready(fwd(tokens, params))

    assert logits.shape == (B, T, VOCAB), logits.shape
    assert logits.dtype == jnp.float32
    print("KERNEL_OK")
</pallas_src>

<mosaic_0001>
module attributes {stable_mosaic.version = 11 : i64} {
  func.func @_linear_kernel(%arg0: i32, %arg1: i32, %arg2: i32, %arg3: memref<16x64xf32, #tpu.memory_space<vmem>>, %arg4: memref<64x192xbf16, #tpu.memory_space<vmem>>, %arg5: memref<1x192xf32, #tpu.memory_space<vmem>>, %arg6: memref<16x192xf32, #tpu.memory_space<vmem>>, %arg7: memref<16x192xf32, #tpu.memory_space<vmem>>) attributes {dimension_semantics = [#tpu.dimension_semantics<parallel>, #tpu.dimension_semantics<parallel>, #tpu.dimension_semantics<arbitrary>], iteration_bounds = array<i64: 1, 1, 1>, scalar_prefetch = 0 : i64, scratch_operands = 1 : i64, tpu.core_type = #tpu.core_type<tc>, window_params = [{transform_indices = @transform_0, window_bounds = array<i64: 16, 64>}, {transform_indices = @transform_1, window_bounds = array<i64: 64, 192>}, {transform_indices = @transform_2, window_bounds = array<i64: 1, 192>}, {transform_indices = @transform_3, window_bounds = array<i64: 16, 192>}]} {
    %c0_i32 = arith.constant 0 : i32
    %0 = arith.cmpi eq, %arg2, %c0_i32 : i32
    %1 = arith.extui %0 : i1 to i32
    %c0_i32_0 = arith.constant 0 : i32
    %2 = arith.cmpi ne, %1, %c0_i32_0 : i32
    scf.if %2 {
      %cst_10 = arith.constant 0.000000e+00 : f32
      %13 = vector.broadcast %cst_10 : f32 to vector<16x192xf32>
      %c0_11 = arith.constant 0 : index
      %c0_12 = arith.constant 0 : index
      %14 = vector.load %arg7[%c0_11, %c0_12] : memref<16x192xf32, #tpu.memory_space<vmem>>, vector<16x192xf32>
      tpu.vector_store %arg7[%c0_11, %c0_12], %13 {strides = array<i32>} : memref<16x192xf32, #tpu.memory_space<vmem>>, vector<16x192xf32>,
    } else {
    }
    %c0 = arith.constant 0 : index
    %c0_1 = arith.constant 0 : index
    %3 = vector.load %arg7[%c0, %c0_1] : memref<16x192xf32, #tpu.memory_space<vmem>>, vector<16x192xf32>
    %c0_2 = arith.constant 0 : index
    %c0_3 = arith.constant 0 : index
    %4 = vector.load %arg3[%c0_2, %c0_3] : memref<16x64xf32, #tpu.memory_space<vmem>>, vector<16x64xf32>
    %5 = arith.truncf %4 : vector<16x64xf32> to vector<16x64xbf16>
    %c0_4 = arith.constant 0 : index
    %c0_5 = arith.constant 0 : index
    %6 = vector.load %arg4[%c0_4, %c0_5] : memref<64x192xbf16, #tpu.memory_space<vmem>>, vector<64x192xbf16>
    %cst = arith.constant dense<0.000000e+00> : vector<16x192xf32>
    %7 = tpu.matmul %5, %6, %cst {dimension_numbers = #tpu.dot_dimension_numbers<[1], [0], [0], [1], [0, 0, 1, 1], [], []>} : vector<16x64xbf16>, vector<64x192xbf16>, vector<16x192xf32> -> vector<16x192xf32>
    %8 = arith.addf %3, %7 : vector<16x192xf32>
    %c0_6 = arith.constant 0 : index
    %c0_7 = arith.constant 0 : index
    %9 = vector.load %arg7[%c0_6, %c0_7] : memref<16x192xf32, #tpu.memory_space<vmem>>, vector<16x192xf32>
    tpu.vector_store %arg7[%c0_6, %c0_7], %8 {strides = array<i32>} : memref<16x192xf32, #tpu.memory_space<vmem>>, vector<16x192xf32>,
    %c0_i32_8 = arith.constant 0 : i32
    %10 = arith.cmpi eq, %arg2, %c0_i32_8 : i32
    %11 = arith.extui %10 : i1 to i32
    %c0_i32_9 = arith.constant 0 : i32
    %12 = arith.cmpi ne, %11, %c0_i32_9 : i32
    scf.if %12 {
      %c0_10 = arith.constant 0 : index
      %c0_11 = arith.constant 0 : index
      %13 = vector.load %arg7[%c0_10, %c0_11] : memref<16x192xf32, #tpu.memory_space<vmem>>, vector<16x192xf32>
      %c0_12 = arith.constant 0 : index
      %c0_13 = arith.constant 0 : index
      %14 = vector.load %arg5[%c0_12, %c0_13] : memref<1x192xf32, #tpu.memory_space<vmem>>, vector<1x192xf32>
      %15 = vector.broadcast %14 : vector<1x192xf32> to vector<16x192xf32>
      %16 = arith.addf %13, %15 : vector<16x192xf32>
      %c0_14 = arith.constant 0 : index
      %c0_15 = arith.constant 0 : index
      %17 = vector.load %arg6[%c0_14, %c0_15] : memref<16x192xf32, #tpu.memory_space<vmem>>, vector<16x192xf32>
      tpu.vector_store %arg6[%c0_14, %c0_15], %16 {strides = array<i32>} : memref<16x192xf32, #tpu.memory_space<vmem>>, vector<16x192xf32>,
    } else {
    }
    return
  }
  func.func @transform_0(%arg0: i32, %arg1: i32, %arg2: i32) -> (i32, i32) {
    %c0_i32 = arith.constant 0 : i32
    return %arg0, %arg2 : i32, i32
  }
  func.func @transform_1(%arg0: i32, %arg1: i32, %arg2: i32) -> (i32, i32) {
    %c0_i32 = arith.constant 0 : i32
    return %arg2, %arg1 : i32, i32
  }
  func.func @transform_2(%arg0: i32, %arg1: i32, %arg2: i32) -> (i32, i32) {
    %c0_i32 = arith.constant 0 : i32
    %c0_i32_0 = arith.constant 0 : i32
    return %c0_i32, %arg1 : i32, i32
  }
  func.func @transform_3(%arg0: i32, %arg1: i32, %arg2: i32) -> (i32, i32) {
    %c0_i32 = arith.constant 0 : i32
    return %arg0, %arg1 : i32, i32
  }
}

module attributes {stable_mosaic.version = 11 : i64} {
  func.func @_attn_kernel(%arg0: i32, %arg1: memref<1x4x2x16xf32, #tpu.memory_space<vmem>>, %arg2: memref<1x4x2x16xf32, #tpu.memory_space<vmem>>, %arg3: memref<1x4x2x16xf32, #tpu.memory_space<vmem>>, %arg4: memref<1x4x2x16xf32, #tpu.memory_space<vmem>>) attributes {dimension_semantics = [#tpu.dimension_semantics<parallel>], iteration_bounds = array<i64: 8>, scalar_prefetch = 0 : i64, scratch_operands = 0 : i64, tpu.core_type = #tpu.core_type<tc>, window_params = [{transform_indices = @transform_0, window_bounds = array<i64: 1, 4, 2, 16>}, {transform_indices = @transform_1, window_bounds = array<i64: 1, 4, 2, 16>}, {transform_indices = @transform_2, window_bounds = array<i64: 1, 4, 2, 16>}, {transform_indices = @transform_3, window_bounds = array<i64: 1, 4, 2, 16>}]} {
    %c0 = arith.constant 0 : index
    %c0_0 = arith.constant 0 : index
    %c0_1 = arith.constant 0 : index
    %c0_2 = arith.constant 0 : index
    %0 = vector.load %arg1[%c0, %c0_0, %c0_1, %c0_2] : memref<1x4x2x16xf32, #tpu.memory_space<vmem>>, vector<1x4x2x16xf32>
    %1 = vector.shape_cast %0 : vector<1x4x2x16xf32> to vector<4x2x16xf32>
    %cst = arith.constant 2.500000e-01 : f32
    %2 = vector.broadcast %cst : f32 to vector<4x2x16xf32>
    %3 = arith.mulf %1, %2 : vector<4x2x16xf32>
    %4 = arith.truncf %3 : vector<4x2x16xf32> to vector<4x2x16xbf16>
    %c0_3 = arith.constant 0 : index
    %c0_4 = arith.constant 0 : index
    %c0_5 = arith.constant 0 : index
    %c0_6 = arith.constant 0 : index
    %5 = vector.load %arg2[%c0_3, %c0_4, %c0_5, %c0_6] : memref<1x4x2x16xf32, #tpu.memory_space<vmem>>, vector<1x4x2x16xf32>
    %6 = vector.shape_cast %5 : vector<1x4x2x16xf32> to vector<4x2x16xf32>
    %7 = arith.truncf %6 : vector<4x2x16xf32> to vector<4x2x16xbf16>
    %c0_7 = arith.constant 0 : index
    %c0_8 = arith.constant 0 : index
    %c0_9 = arith.constant 0 : index
    %c0_10 = arith.constant 0 : index
    %8 = vector.load %arg3[%c0_7, %c0_8, %c0_9, %c0_10] : memref<1x4x2x16xf32, #tpu.memory_space<vmem>>, vector<1x4x2x16xf32>
    %9 = vector.shape_cast %8 : vector<1x4x2x16xf32> to vector<4x2x16xf32>
    %10 = arith.truncf %9 : vector<4x2x16xf32> to vector<4x2x16xbf16>
    "tpu.trace_start"() <{level = 10 : i32, message = "hqd,hkd->hqk"}> : () -> ()
    %cst_11 = arith.constant dense<0.000000e+00> : vector<4x2x2xf32>
    %11 = tpu.matmul %4, %7, %cst_11 {dimension_numbers = #tpu.dot_dimension_numbers<[2], [2], [1], [1], [0, 0, 0, 1, 1, 1], [0], [0]>} : vector<4x2x16xbf16>, vector<4x2x16xbf16>, vector<4x2x2xf32> -> vector<4x2x2xf32>
    "tpu.trace_stop"() : () -> ()
    %cst_12 = arith.constant dense<0xFF800000> : vector<4x2xf32>
    %12 = vector.multi_reduction <maximumf>, %11, %cst_12 [2] : vector<4x2x2xf32> to vector<4x2xf32>
    %13 = vector.shape_cast %12 : vector<4x2xf32> to vector<4x2x1xf32>
    %14 = vector.broadcast %13 : vector<4x2x1xf32> to vector<4x2x2xf32>
    %15 = arith.subf %11, %14 : vector<4x2x2xf32>
    %16 = math.exp %15 : vector<4x2x2xf32>
    %cst_13 = arith.constant dense<0.000000e+00> : vector<4x2xf32>
    %17 = vector.multi_reduction <add>, %16, %cst_13 [2] : vector<4x2x2xf32> to vector<4x2xf32>
    %18 = vector.shape_cast %17 : vector<4x2xf32> to vector<4x2x1xf32>
    %19 = tpu.reciprocal %18 {approx = true} : vector<4x2x1xf32> -> vector<4x2x1xf32>
    %20 = vector.broadcast %19 : vector<4x2x1xf32> to vector<4x2x2xf32>
    %21 = arith.mulf %16, %20 : vector<4x2x2xf32>
    %22 = arith.truncf %21 : vector<4x2x2xf32> to vector<4x2x2xbf16>
    "tpu.trace_start"() <{level = 10 : i32, message = "hqk,hkd->hqd"}> : () -> ()
    %cst_14 = arith.constant dense<0.000000e+00> : vector<4x2x16xf32>
    %23 = tpu.matmul %22, %10, %cst_14 {dimension_numbers = #tpu.dot_dimension_numbers<[2], [1], [1], [2], [0, 0, 0, 1, 1, 2], [0], [0]>} : vector<4x2x2xbf16>, vector<4x2x16xbf16>, vector<4x2x16xf32> -> vector<4x2x16xf32>
    "tpu.trace_stop"() : () -> ()
    %c0_15 = arith.constant 0 : index
    %c0_16 = arith.constant 0 : index
    %c0_17 = arith.constant 0 : index
    %c0_18 = arith.constant 0 : index
    %24 = vector.load %arg4[%c0_15, %c0_16, %c0_17, %c0_18] : memref<1x4x2x16xf32, #tpu.memory_space<vmem>>, vector<1x4x2x16xf32>
    %25 = vector.shape_cast %24 : vector<1x4x2x16xf32> to vector<4x2x16xf32>
    %26 = vector.shape_cast %23 : vector<4x2x16xf32> to vector<1x4x2x16xf32>
    tpu.vector_store %arg4[%c0_15, %c0_16, %c0_17, %c0_18], %26 {strides = array<i32>} : memref<1x4x2x16xf32, #tpu.memory_space<vmem>>, vector<1x4x2x16xf32>,
    return
  }
  func.func @transform_0(%arg0: i32) -> (i32, i32, i32, i32) {
    %c0_i32 = arith.constant 0 : i32
    %c0_i32_0 = arith.constant 0 : i32
    %c0_i32_1 = arith.constant 0 : i32
    %c0_i32_2 = arith.constant 0 : i32
    return %arg0, %c0_i32, %c0_i32_0, %c0_i32_1 : i32, i32, i32, i32
  }
  func.func @transform_1(%arg0: i32) -> (i32, i32, i32, i32) {
    %c0_i32 = arith.constant 0 : i32
    %c0_i32_0 = arith.constant 0 : i32
    %c0_i32_1 = arith.constant 0 : i32
    %c0_i32_2 = arith.constant 0 : i32
    return %arg0, %c0_i32, %c0_i32_0, %c0_i32_1 : i32, i32, i32, i32
  }
  func.func @transform_2(%arg0: i32) -> (i32, i32, i32, i32) {
    %c0_i32 = arith.constant 0 : i32
    %c0_i32_0 = arith.constant 0 : i32
    %c0_i32_1 = arith.constant 0 : i32
    %c0_i32_2 = arith.constant 0 : i32
    return %arg0, %c0_i32, %c0_i32_0, %c0_i32_1 : i32, i32, i32, i32
  }
  func.func @transform_3(%arg0: i32) -> (i32, i32, i32, i32) {
    %c0_i32 = arith.constant 0 : i32
    %c0_i32_0 = arith.constant 0 : i32
    %c0_i32_1 = arith.constant 0 : i32
    %c0_i32_2 = arith.constant 0 : i32
    return %arg0, %c0_i32, %c0_i32_0, %c0_i32_1 : i32, i32, i32, i32
  }
}

module attributes {stable_mosaic.version = 11 : i64} {
  func.func @_linear_add_ln_kernel(%arg0: i32, %arg1: i32, %arg2: memref<16x64xf32, #tpu.memory_space<vmem>>, %arg3: memref<64x64xbf16, #tpu.memory_space<vmem>>, %arg4: memref<1x64xf32, #tpu.memory_space<vmem>>, %arg5: memref<16x64xf32, #tpu.memory_space<vmem>>, %arg6: memref<1x64xf32, #tpu.memory_space<vmem>>, %arg7: memref<1x64xf32, #tpu.memory_space<vmem>>, %arg8: memref<16x64xf32, #tpu.memory_space<vmem>>, %arg9: memref<16x64xf32, #tpu.memory_space<vmem>>) attributes {dimension_semantics = [#tpu.dimension_semantics<parallel>, #tpu.dimension_semantics<arbitrary>], iteration_bounds = array<i64: 1, 1>, scalar_prefetch = 0 : i64, scratch_operands = 1 : i64, tpu.core_type = #tpu.core_type<tc>, window_params = [{transform_indices = @transform_0, window_bounds = array<i64: 16, 64>}, {transform_indices = @transform_1, window_bounds = array<i64: 64, 64>}, {pipeline_mode = #tpu.pipeline_mode<synchronous>, transform_indices = @transform_2, window_bounds = array<i64: 1, 64>}, {transform_indices = @transform_3, window_bounds = array<i64: 16, 64>}, {pipeline_mode = #tpu.pipeline_mode<synchronous>, transform_indices = @transform_4, window_bounds = array<i64: 1, 64>}, {pipeline_mode = #tpu.pipeline_mode<synchronous>, transform_indices = @transform_5, window_bounds = array<i64: 1, 64>}, {transform_indices = @transform_6, window_bounds = array<i64: 16, 64>}]} {
    %c0_i32 = arith.constant 0 : i32
    %0 = arith.cmpi eq, %arg1, %c0_i32 : i32
    %1 = arith.extui %0 : i1 to i32
    %c0_i32_0 = arith.constant 0 : i32
    %2 = arith.cmpi ne, %1, %c0_i32_0 : i32
    scf.if %2 {
      %cst_10 = arith.constant 0.000000e+00 : f32
      %13 = vector.broadcast %cst_10 : f32 to vector<16x64xf32>
      %c0_11 = arith.constant 0 : index
      %c0_12 = arith.constant 0 : index
      %14 = vector.load %arg9[%c0_11, %c0_12] : memref<16x64xf32, #tpu.memory_space<vmem>>, vector<16x64xf32>
      tpu.vector_store %arg9[%c0_11, %c0_12], %13 {strides = array<i32>} : memref<16x64xf32, #tpu.memory_space<vmem>>, vector<16x64xf32>,
    } else {
    }
    %c0 = arith.constant 0 : index
    %c0_1 = arith.constant 0 : index
    %3 = vector.load %arg9[%c0, %c0_1] : memref<16x64xf32, #tpu.memory_space<vmem>>, vector<16x64xf32>
    %c0_2 = arith.constant 0 : index
    %c0_3 = arith.constant 0 : index
    %4 = vector.load %arg2[%c0_2, %c0_3] : memref<16x64xf32, #tpu.memory_space<vmem>>, vector<16x64xf32>
    %5 = arith.truncf %4 : vector<16x64xf32> to vector<16x64xbf16>
    %c0_4 = arith.constant 0 : index
    %c0_5 = arith.constant 0 : index
    %6 = vector.load %arg3[%c0_4, %c0_5] : memref<64x64xbf16, #tpu.memory_space<vmem>>, vector<64x64xbf16>
    %cst = arith.constant dense<0.000000e+00> : vector<16x64xf32>
    %7 = tpu.matmul %5, %6, %cst {dimension_numbers = #tpu.dot_dimension_numbers<[1], [0], [0], [1], [0, 0, 1, 1], [], []>} : vector<16x64xbf16>, vector<64x64xbf16>, vector<16x64xf32> -> vector<16x64xf32>
    %8 = arith.addf %3, %7 : vector<16x64xf32>
    %c0_6 = arith.constant 0 : index
    %c0_7 = arith.constant 0 : index
    %9 = vector.load %arg9[%c0_6, %c0_7] : memref<16x64xf32, #tpu.memory_space<vmem>>, vector<16x64xf32>
    tpu.vector_store %arg9[%c0_6, %c0_7], %8 {strides = array<i32>} : memref<16x64xf32, #tpu.memory_space<vmem>>, vector<16x64xf32>,
    %c0_i32_8 = arith.constant 0 : i32
    %10 = arith.cmpi eq, %arg1, %c0_i32_8 : i32
    %11 = arith.extui %10 : i1 to i32
    %c0_i32_9 = arith.constant 0 : i32
    %12 = arith.cmpi ne, %11, %c0_i32_9 : i32
    scf.if %12 {
      %c0_10 = arith.constant 0 : index
      %c0_11 = arith.constant 0 : index
      %13 = vector.load %arg9[%c0_10, %c0_11] : memref<16x64xf32, #tpu.memory_space<vmem>>, vector<16x64xf32>
      %c0_12 = arith.constant 0 : index
      %c0_13 = arith.constant 0 : index
      %14 = vector.load %arg4[%c0_12, %c0_13] : memref<1x64xf32, #tpu.memory_space<vmem>>, vector<1x64xf32>
      %15 = vector.broadcast %14 : vector<1x64xf32> to vector<16x64xf32>
      %16 = arith.addf %13, %15 : vector<16x64xf32>
      %c0_14 = arith.constant 0 : index
      %c0_15 = arith.constant 0 : index
      %17 = vector.load %arg5[%c0_14, %c0_15] : memref<16x64xf32, #tpu.memory_space<vmem>>, vector<16x64xf32>
      %18 = arith.addf %16, %17 : vector<16x64xf32>
      %cst_16 = arith.constant dense<0.000000e+00> : vector<16xf32>
      %19 = vector.multi_reduction <add>, %18, %cst_16 [1] : vector<16x64xf32> to vector<16xf32>
      %20 = vector.shape_cast %19 : vector<16xf32> to vector<16x1xf32>
      %cst_17 = arith.constant 6.400000e+01 : f32
      %21 = vector.broadcast %cst_17 : f32 to vector<16x1xf32>
      %22 = arith.divf %20, %21 : vector<16x1xf32>
      %23 = vector.broadcast %22 : vector<16x1xf32> to vector<16x64xf32>
      %24 = arith.subf %18, %23 : vector<16x64xf32>
      %25 = arith.mulf %24, %24 : vector<16x64xf32>
      %cst_18 = arith.constant dense<0.000000e+00> : vector<16xf32>
      %26 = vector.multi_reduction <add>, %25, %cst_18 [1] : vector<16x64xf32> to vector<16xf32>
      %27 = vector.shape_cast %26 : vector<16xf32> to vector<16x1xf32>
      %cst_19 = arith.constant 6.400000e+01 : f32
      %28 = vector.broadcast %cst_19 : f32 to vector<16x1xf32>
      %29 = arith.divf %27, %28 : vector<16x1xf32>
      %30 = vector.broadcast %22 : vector<16x1xf32> to vector<16x64xf32>
      %31 = arith.subf %18, %30 : vector<16x64xf32>
      %cst_20 = arith.constant 9.99999974E-6 : f32
      %32 = vector.broadcast %cst_20 : f32 to vector<16x1xf32>
      %33 = arith.addf %29, %32 : vector<16x1xf32>
      %34 = math.rsqrt %33 : vector<16x1xf32>
      %35 = vector.broadcast %34 : vector<16x1xf32> to vector<16x64xf32>
      %36 = arith.mulf %31, %35 : vector<16x64xf32>
      %c0_21 = arith.constant 0 : index
      %c0_22 = arith.constant 0 : index
      %37 = vector.load %arg6[%c0_21, %c0_22] : memref<1x64xf32, #tpu.memory_space<vmem>>, vector<1x64xf32>
      %38 = vector.broadcast %37 : vector<1x64xf32> to vector<16x64xf32>
      %39 = arith.mulf %36, %38 : vector<16x64xf32>
      %c0_23 = arith.constant 0 : index
      %c0_24 = arith.constant 0 : index
      %40 = vector.load %arg7[%c0_23, %c0_24] : memref<1x64xf32, #tpu.memory_space<vmem>>, vector<1x64xf32>
      %41 = vector.broadcast %40 : vector<1x64xf32> to vector<16x64xf32>
      %42 = arith.addf %39, %41 : vector<16x64xf32>
      %c0_25 = arith.constant 0 : index
      %c0_26 = arith.constant 0 : index
      %43 = vector.load %arg8[%c0_25, %c0_26] : memref<16x64xf32, #tpu.memory_space<vmem>>, vector<16x64xf32>
      tpu.vector_store %arg8[%c0_25, %c0_26], %42 {strides = array<i32>} : memref<16x64xf32, #tpu.memory_space<vmem>>, vector<16x64xf32>,
    } else {
    }
    return
  }
  func.func @transform_0(%arg0: i32, %arg1: i32) -> (i32, i32) {
    %c0_i32 = arith.constant 0 : i32
    return %arg0, %arg1 : i32, i32
  }
  func.func @transform_1(%arg0: i32, %arg1: i32) -> (i32, i32) {
    %c0_i32 = arith.constant 0 : i32
    %c0_i32_0 = arith.constant 0 : i32
    return %arg1, %c0_i32 : i32, i32
  }
  func.func @transform_2(%arg0: i32, %arg1: i32) -> (i32, i32) {
    %c0_i32 = arith.constant 0 : i32
    %c0_i32_0 = arith.constant 0 : i32
    %c0_i32_1 = arith.constant 0 : i32
    return %c0_i32, %c0_i32_0 : i32, i32
  }
  func.func @transform_3(%arg0: i32, %arg1: i32) -> (i32, i32) {
    %c0_i32 = arith.constant 0 : i32
    %c0_i32_0 = arith.constant 0 : i32
    return %arg0, %c0_i32 : i32, i32
  }
  func.func @transform_4(%arg0: i32, %arg1: i32) -> (i32, i32) {
    %c0_i32 = arith.constant 0 : i32
    %c0_i32_0 = arith.constant 0 : i32
    %c0_i32_1 = arith.constant 0 : i32
    return %c0_i32, %c0_i32_0 : i32, i32
  }
  func.func @transform_5(%arg0: i32, %arg1: i32) -> (i32, i32) {
    %c0_i32 = arith.constant 0 : i32
    %c0_i32_0 = arith.constant 0 : i32
    %c0_i32_1 = arith.constant 0 : i32
    return %c0_i32, %c0_i32_0 : i32, i32
  }
  func.func @transform_6(%arg0: i32, %arg1: i32) -> (i32, i32) {
    %c0_i32 = arith.constant 0 : i32
    %c0_i32_0 = arith.constant 0 : i32
    return %arg0, %c0_i32 : i32, i32
  }
}

module attributes {stable_mosaic.version = 11 : i64} {
  func.func @_linear_kernel(%arg0: i32, %arg1: i32, %arg2: i32, %arg3: memref<16x64xf32, #tpu.memory_space<vmem>>, %arg4: memref<64x64xbf16, #tpu.memory_space<vmem>>, %arg5: memref<1x64xf32, #tpu.memory_space<vmem>>, %arg6: memref<16x64xf32, #tpu.memory_space<vmem>>, %arg7: memref<16x64xf32, #tpu.memory_space<vmem>>) attributes {dimension_semantics = [#tpu.dimension_semantics<parallel>, #tpu.dimension_semantics<parallel>, #tpu.dimension_semantics<arbitrary>], iteration_bounds = array<i64: 1, 1, 1>, scalar_prefetch = 0 : i64, scratch_operands = 1 : i64, tpu.core_type = #tpu.core_type<tc>, window_params = [{transform_indices = @transform_0, window_bounds = array<i64: 16, 64>}, {transform_indices = @transform_1, window_bounds = array<i64: 64, 64>}, {transform_indices = @transform_2, window_bounds = array<i64: 1, 64>}, {transform_indices = @transform_3, window_bounds = array<i64: 16, 64>}]} {
    %c0_i32 = arith.constant 0 : i32
    %0 = arith.cmpi eq, %arg2, %c0_i32 : i32
    %1 = arith.extui %0 : i1 to i32
    %c0_i32_0 = arith.constant 0 : i32
    %2 = arith.cmpi ne, %1, %c0_i32_0 : i32
    scf.if %2 {
      %cst_10 = arith.constant 0.000000e+00 : f32
      %13 = vector.broadcast %cst_10 : f32 to vector<16x64xf32>
      %c0_11 = arith.constant 0 : index
      %c0_12 = arith.constant 0 : index
      %14 = vector.load %arg7[%c0_11, %c0_12] : memref<16x64xf32, #tpu.memory_space<vmem>>, vector<16x64xf32>
      tpu.vector_store %arg7[%c0_11, %c0_12], %13 {strides = array<i32>} : memref<16x64xf32, #tpu.memory_space<vmem>>, vector<16x64xf32>,
    } else {
    }
    %c0 = arith.constant 0 : index
    %c0_1 = arith.constant 0 : index
    %3 = vector.load %arg7[%c0, %c0_1] : memref<16x64xf32, #tpu.memory_space<vmem>>, vector<16x64xf32>
    %c0_2 = arith.constant 0 : index
    %c0_3 = arith.constant 0 : index
    %4 = vector.load %arg3[%c0_2, %c0_3] : memref<16x64xf32, #tpu.memory_space<vmem>>, vector<16x64xf32>
    %5 = arith.truncf %4 : vector<16x64xf32> to vector<16x64xbf16>
    %c0_4 = arith.constant 0 : index
    %c0_5 = arith.constant 0 : index
    %6 = vector.load %arg4[%c0_4, %c0_5] : memref<64x64xbf16, #tpu.memory_space<vmem>>, vector<64x64xbf16>
    %cst = arith.constant dense<0.000000e+00> : vector<16x64xf32>
    %7 = tpu.matmul %5, %6, %cst {dimension_numbers = #tpu.dot_dimension_numbers<[1], [0], [0], [1], [0, 0, 1, 1], [], []>} : vector<16x64xbf16>, vector<64x64xbf16>, vector<16x64xf32> -> vector<16x64xf32>
    %8 = arith.addf %3, %7 : vector<16x64xf32>
    %c0_6 = arith.constant 0 : index
    %c0_7 = arith.constant 0 : index
    %9 = vector.load %arg7[%c0_6, %c0_7] : memref<16x64xf32, #tpu.memory_space<vmem>>, vector<16x64xf32>
    tpu.vector_store %arg7[%c0_6, %c0_7], %8 {strides = array<i32>} : memref<16x64xf32, #tpu.memory_space<vmem>>, vector<16x64xf32>,
    %c0_i32_8 = arith.constant 0 : i32
    %10 = arith.cmpi eq, %arg2, %c0_i32_8 : i32
    %11 = arith.extui %10 : i1 to i32
    %c0_i32_9 = arith.constant 0 : i32
    %12 = arith.cmpi ne, %11, %c0_i32_9 : i32
    scf.if %12 {
      %c0_10 = arith.constant 0 : index
      %c0_11 = arith.constant 0 : index
      %13 = vector.load %arg7[%c0_10, %c0_11] : memref<16x64xf32, #tpu.memory_space<vmem>>, vector<16x64xf32>
      %c0_12 = arith.constant 0 : index
      %c0_13 = arith.constant 0 : index
      %14 = vector.load %arg5[%c0_12, %c0_13] : memref<1x64xf32, #tpu.memory_space<vmem>>, vector<1x64xf32>
      %15 = vector.broadcast %14 : vector<1x64xf32> to vector<16x64xf32>
      %16 = arith.addf %13, %15 : vector<16x64xf32>
      %c0_14 = arith.constant 0 : index
      %c0_15 = arith.constant 0 : index
      %17 = vector.load %arg6[%c0_14, %c0_15] : memref<16x64xf32, #tpu.memory_space<vmem>>, vector<16x64xf32>
      tpu.vector_store %arg6[%c0_14, %c0_15], %16 {strides = array<i32>} : memref<16x64xf32, #tpu.memory_space<vmem>>, vector<16x64xf32>,
    } else {
    }
    return
  }
  func.func @transform_0(%arg0: i32, %arg1: i32, %arg2: i32) -> (i32, i32) {
    %c0_i32 = arith.constant 0 : i32
    return %arg0, %arg2 : i32, i32
  }
  func.func @transform_1(%arg0: i32, %arg1: i32, %arg2: i32) -> (i32, i32) {
    %c0_i32 = arith.constant 0 : i32
    return %arg2, %arg1 : i32, i32
  }
  func.func @transform_2(%arg0: i32, %arg1: i32, %arg2: i32) -> (i32, i32) {
    %c0_i32 = arith.constant 0 : i32
    %c0_i32_0 = arith.constant 0 : i32
    return %c0_i32, %arg1 : i32, i32
  }
  func.func @transform_3(%arg0: i32, %arg1: i32, %arg2: i32) -> (i32, i32) {
    %c0_i32 = arith.constant 0 : i32
    return %arg0, %arg1 : i32, i32
  }
}

module attributes {stable_mosaic.version = 11 : i64} {
  func.func @_linear_kernel(%arg0: i32, %arg1: i32, %arg2: i32, %arg3: memref<16x64xf32, #tpu.memory_space<vmem>>, %arg4: memref<64x128xbf16, #tpu.memory_space<vmem>>, %arg5: memref<1x128xf32, #tpu.memory_space<vmem>>, %arg6: memref<16x128xf32, #tpu.memory_space<vmem>>, %arg7: memref<16x128xf32, #tpu.memory_space<vmem>>) attributes {dimension_semantics = [#tpu.dimension_semantics<parallel>, #tpu.dimension_semantics<parallel>, #tpu.dimension_semantics<arbitrary>], iteration_bounds = array<i64: 1, 1, 1>, scalar_prefetch = 0 : i64, scratch_operands = 1 : i64, tpu.core_type = #tpu.core_type<tc>, window_params = [{transform_indices = @transform_0, window_bounds = array<i64: 16, 64>}, {transform_indices = @transform_1, window_bounds = array<i64: 64, 128>}, {transform_indices = @transform_2, window_bounds = array<i64: 1, 128>}, {transform_indices = @transform_3, window_bounds = array<i64: 16, 128>}]} {
    %c0_i32 = arith.constant 0 : i32
    %0 = arith.cmpi eq, %arg2, %c0_i32 : i32
    %1 = arith.extui %0 : i1 to i32
    %c0_i32_0 = arith.constant 0 : i32
    %2 = arith.cmpi ne, %1, %c0_i32_0 : i32
    scf.if %2 {
      %cst_10 = arith.constant 0.000000e+00 : f32
      %13 = vector.broadcast %cst_10 : f32 to vector<16x128xf32>
      %c0_11 = arith.constant 0 : index
      %c0_12 = arith.constant 0 : index
      %14 = vector.load %arg7[%c0_11, %c0_12] : memref<16x128xf32, #tpu.memory_space<vmem>>, vector<16x128xf32>
      tpu.vector_store %arg7[%c0_11, %c0_12], %13 {strides = array<i32>} : memref<16x128xf32, #tpu.memory_space<vmem>>, vector<16x128xf32>,
    } else {
    }
    %c0 = arith.constant 0 : index
    %c0_1 = arith.constant 0 : index
    %3 = vector.load %arg7[%c0, %c0_1] : memref<16x128xf32, #tpu.memory_space<vmem>>, vector<16x128xf32>
    %c0_2 = arith.constant 0 : index
    %c0_3 = arith.constant 0 : index
    %4 = vector.load %arg3[%c0_2, %c0_3] : memref<16x64xf32, #tpu.memory_space<vmem>>, vector<16x64xf32>
    %5 = arith.truncf %4 : vector<16x64xf32> to vector<16x64xbf16>
    %c0_4 = arith.constant 0 : index
    %c0_5 = arith.constant 0 : index
    %6 = vector.load %arg4[%c0_4, %c0_5] : memref<64x128xbf16, #tpu.memory_space<vmem>>, vector<64x128xbf16>
    %cst = arith.constant dense<0.000000e+00> : vector<16x128xf32>
    %7 = tpu.matmul %5, %6, %cst {dimension_numbers = #tpu.dot_dimension_numbers<[1], [0], [0], [1], [0, 0, 1, 1], [], []>} : vector<16x64xbf16>, vector<64x128xbf16>, vector<16x128xf32> -> vector<16x128xf32>
    %8 = arith.addf %3, %7 : vector<16x128xf32>
    %c0_6 = arith.constant 0 : index
    %c0_7 = arith.constant 0 : index
    %9 = vector.load %arg7[%c0_6, %c0_7] : memref<16x128xf32, #tpu.memory_space<vmem>>, vector<16x128xf32>
    tpu.vector_store %arg7[%c0_6, %c0_7], %8 {strides = array<i32>} : memref<16x128xf32, #tpu.memory_space<vmem>>, vector<16x128xf32>,
    %c0_i32_8 = arith.constant 0 : i32
    %10 = arith.cmpi eq, %arg2, %c0_i32_8 : i32
    %11 = arith.extui %10 : i1 to i32
    %c0_i32_9 = arith.constant 0 : i32
    %12 = arith.cmpi ne, %11, %c0_i32_9 : i32
    scf.if %12 {
      %c0_10 = arith.constant 0 : index
      %c0_11 = arith.constant 0 : index
      %13 = vector.load %arg7[%c0_10, %c0_11] : memref<16x128xf32, #tpu.memory_space<vmem>>, vector<16x128xf32>
      %c0_12 = arith.constant 0 : index
      %c0_13 = arith.constant 0 : index
      %14 = vector.load %arg5[%c0_12, %c0_13] : memref<1x128xf32, #tpu.memory_space<vmem>>, vector<1x128xf32>
      %15 = vector.broadcast %14 : vector<1x128xf32> to vector<16x128xf32>
      %16 = arith.addf %13, %15 : vector<16x128xf32>
      %c0_14 = arith.constant 0 : index
      %c0_15 = arith.constant 0 : index
      %17 = vector.load %arg6[%c0_14, %c0_15] : memref<16x128xf32, #tpu.memory_space<vmem>>, vector<16x128xf32>
      tpu.vector_store %arg6[%c0_14, %c0_15], %16 {strides = array<i32>} : memref<16x128xf32, #tpu.memory_space<vmem>>, vector<16x128xf32>,
    } else {
    }
    return
  }
  func.func @transform_0(%arg0: i32, %arg1: i32, %arg2: i32) -> (i32, i32) {
    %c0_i32 = arith.constant 0 : i32
    return %arg0, %arg2 : i32, i32
  }
  func.func @transform_1(%arg0: i32, %arg1: i32, %arg2: i32) -> (i32, i32) {
    %c0_i32 = arith.constant 0 : i32
    return %arg2, %arg1 : i32, i32
  }
  func.func @transform_2(%arg0: i32, %arg1: i32, %arg2: i32) -> (i32, i32) {
    %c0_i32 = arith.constant 0 : i32
    %c0_i32_0 = arith.constant 0 : i32
    return %c0_i32, %arg1 : i32, i32
  }
  func.func @transform_3(%arg0: i32, %arg1: i32, %arg2: i32) -> (i32, i32) {
    %c0_i32 = arith.constant 0 : i32
    return %arg0, %arg1 : i32, i32
  }
}

module attributes {stable_mosaic.version = 11 : i64} {
  func.func @_linear_add_ln_kernel(%arg0: i32, %arg1: i32, %arg2: memref<16x256xf32, #tpu.memory_space<vmem>>, %arg3: memref<256x64xbf16, #tpu.memory_space<vmem>>, %arg4: memref<1x64xf32, #tpu.memory_space<vmem>>, %arg5: memref<16x64xf32, #tpu.memory_space<vmem>>, %arg6: memref<1x64xf32, #tpu.memory_space<vmem>>, %arg7: memref<1x64xf32, #tpu.memory_space<vmem>>, %arg8: memref<16x64xf32, #tpu.memory_space<vmem>>, %arg9: memref<16x64xf32, #tpu.memory_space<vmem>>) attributes {dimension_semantics = [#tpu.dimension_semantics<parallel>, #tpu.dimension_semantics<arbitrary>], iteration_bounds = array<i64: 1, 1>, scalar_prefetch = 0 : i64, scratch_operands = 1 : i64, tpu.core_type = #tpu.core_type<tc>, window_params = [{transform_indices = @transform_0, window_bounds = array<i64: 16, 256>}, {transform_indices = @transform_1, window_bounds = array<i64: 256, 64>}, {pipeline_mode = #tpu.pipeline_mode<synchronous>, transform_indices = @transform_2, window_bounds = array<i64: 1, 64>}, {transform_indices = @transform_3, window_bounds = array<i64: 16, 64>}, {pipeline_mode = #tpu.pipeline_mode<synchronous>, transform_indices = @transform_4, window_bounds = array<i64: 1, 64>}, {pipeline_mode = #tpu.pipeline_mode<synchronous>, transform_indices = @transform_5, window_bounds = array<i64: 1, 64>}, {transform_indices = @transform_6, window_bounds = array<i64: 16, 64>}]} {
    %c0_i32 = arith.constant 0 : i32
    %0 = arith.cmpi eq, %arg1, %c0_i32 : i32
    %1 = arith.extui %0 : i1 to i32
    %c0_i32_0 = arith.constant 0 : i32
    %2 = arith.cmpi ne, %1, %c0_i32_0 : i32
    scf.if %2 {
      %cst_10 = arith.constant 0.000000e+00 : f32
      %13 = vector.broadcast %cst_10 : f32 to vector<16x64xf32>
      %c0_11 = arith.constant 0 : index
      %c0_12 = arith.constant 0 : index
      %14 = vector.load %arg9[%c0_11, %c0_12] : memref<16x64xf32, #tpu.memory_space<vmem>>, vector<16x64xf32>
      tpu.vector_store %arg9[%c0_11, %c0_12], %13 {strides = array<i32>} : memref<16x64xf32, #tpu.memory_space<vmem>>, vector<16x64xf32>,
    } else {
    }
    %c0 = arith.constant 0 : index
    %c0_1 = arith.constant 0 : index
    %3 = vector.load %arg9[%c0, %c0_1] : memref<16x64xf32, #tpu.memory_space<vmem>>, vector<16x64xf32>
    %c0_2 = arith.constant 0 : index
    %c0_3 = arith.constant 0 : index
    %4 = vector.load %arg2[%c0_2, %c0_3] : memref<16x256xf32, #tpu.memory_space<vmem>>, vector<16x256xf32>
    %5 = arith.truncf %4 : vector<16x256xf32> to vector<16x256xbf16>
    %c0_4 = arith.constant 0 : index
    %c0_5 = arith.constant 0 : index
    %6 = vector.load %arg3[%c0_4, %c0_5] : memref<256x64xbf16, #tpu.memory_space<vmem>>, vector<256x64xbf16>
    %cst = arith.constant dense<0.000000e+00> : vector<16x64xf32>
    %7 = tpu.matmul %5, %6, %cst {dimension_numbers = #tpu.dot_dimension_numbers<[1], [0], [0], [1], [0, 0, 1, 1], [], []>} : vector<16x256xbf16>, vector<256x64xbf16>, vector<16x64xf32> -> vector<16x64xf32>
    %8 = arith.addf %3, %7 : vector<16x64xf32>
    %c0_6 = arith.constant 0 : index
    %c0_7 = arith.constant 0 : index
    %9 = vector.load %arg9[%c0_6, %c0_7] : memref<16x64xf32, #tpu.memory_space<vmem>>, vector<16x64xf32>
    tpu.vector_store %arg9[%c0_6, %c0_7], %8 {strides = array<i32>} : memref<16x64xf32, #tpu.memory_space<vmem>>, vector<16x64xf32>,
    %c0_i32_8 = arith.constant 0 : i32
    %10 = arith.cmpi eq, %arg1, %c0_i32_8 : i32
    %11 = arith.extui %10 : i1 to i32
    %c0_i32_9 = arith.constant 0 : i32
    %12 = arith.cmpi ne, %11, %c0_i32_9 : i32
    scf.if %12 {
      %c0_10 = arith.constant 0 : index
      %c0_11 = arith.constant 0 : index
      %13 = vector.load %arg9[%c0_10, %c0_11] : memref<16x64xf32, #tpu.memory_space<vmem>>, vector<16x64xf32>
      %c0_12 = arith.constant 0 : index
      %c0_13 = arith.constant 0 : index
      %14 = vector.load %arg4[%c0_12, %c0_13] : memref<1x64xf32, #tpu.memory_space<vmem>>, vector<1x64xf32>
      %15 = vector.broadcast %14 : vector<1x64xf32> to vector<16x64xf32>
      %16 = arith.addf %13, %15 : vector<16x64xf32>
      %c0_14 = arith.constant 0 : index
      %c0_15 = arith.constant 0 : index
      %17 = vector.load %arg5[%c0_14, %c0_15] : memref<16x64xf32, #tpu.memory_space<vmem>>, vector<16x64xf32>
      %18 = arith.addf %16, %17 : vector<16x64xf32>
      %cst_16 = arith.constant dense<0.000000e+00> : vector<16xf32>
      %19 = vector.multi_reduction <add>, %18, %cst_16 [1] : vector<16x64xf32> to vector<16xf32>
      %20 = vector.shape_cast %19 : vector<16xf32> to vector<16x1xf32>
      %cst_17 = arith.constant 6.400000e+01 : f32
      %21 = vector.broadcast %cst_17 : f32 to vector<16x1xf32>
      %22 = arith.divf %20, %21 : vector<16x1xf32>
      %23 = vector.broadcast %22 : vector<16x1xf32> to vector<16x64xf32>
      %24 = arith.subf %18, %23 : vector<16x64xf32>
      %25 = arith.mulf %24, %24 : vector<16x64xf32>
      %cst_18 = arith.constant dense<0.000000e+00> : vector<16xf32>
      %26 = vector.multi_reduction <add>, %25, %cst_18 [1] : vector<16x64xf32> to vector<16xf32>
      %27 = vector.shape_cast %26 : vector<16xf32> to vector<16x1xf32>
      %cst_19 = arith.constant 6.400000e+01 : f32
      %28 = vector.broadcast %cst_19 : f32 to vector<16x1xf32>
      %29 = arith.divf %27, %28 : vector<16x1xf32>
      %30 = vector.broadcast %22 : vector<16x1xf32> to vector<16x64xf32>
      %31 = arith.subf %18, %30 : vector<16x64xf32>
      %cst_20 = arith.constant 9.99999974E-6 : f32
      %32 = vector.broadcast %cst_20 : f32 to vector<16x1xf32>
      %33 = arith.addf %29, %32 : vector<16x1xf32>
      %34 = math.rsqrt %33 : vector<16x1xf32>
      %35 = vector.broadcast %34 : vector<16x1xf32> to vector<16x64xf32>
      %36 = arith.mulf %31, %35 : vector<16x64xf32>
      %c0_21 = arith.constant 0 : index
      %c0_22 = arith.constant 0 : index
      %37 = vector.load %arg6[%c0_21, %c0_22] : memref<1x64xf32, #tpu.memory_space<vmem>>, vector<1x64xf32>
      %38 = vector.broadcast %37 : vector<1x64xf32> to vector<16x64xf32>
      %39 = arith.mulf %36, %38 : vector<16x64xf32>
      %c0_23 = arith.constant 0 : index
      %c0_24 = arith.constant 0 : index
      %40 = vector.load %arg7[%c0_23, %c0_24] : memref<1x64xf32, #tpu.memory_space<vmem>>, vector<1x64xf32>
      %41 = vector.broadcast %40 : vector<1x64xf32> to vector<16x64xf32>
      %42 = arith.addf %39, %41 : vector<16x64xf32>
      %c0_25 = arith.constant 0 : index
      %c0_26 = arith.constant 0 : index
      %43 = vector.load %arg8[%c0_25, %c0_26] : memref<16x64xf32, #tpu.memory_space<vmem>>, vector<16x64xf32>
      tpu.vector_store %arg8[%c0_25, %c0_26], %42 {strides = array<i32>} : memref<16x64xf32, #tpu.memory_space<vmem>>, vector<16x64xf32>,
    } else {
    }
    return
  }
  func.func @transform_0(%arg0: i32, %arg1: i32) -> (i32, i32) {
    %c0_i32 = arith.constant 0 : i32
    return %arg0, %arg1 : i32, i32
  }
  func.func @transform_1(%arg0: i32, %arg1: i32) -> (i32, i32) {
    %c0_i32 = arith.constant 0 : i32
    %c0_i32_0 = arith.constant 0 : i32
    return %arg1, %c0_i32 : i32, i32
  }
  func.func @transform_2(%arg0: i32, %arg1: i32) -> (i32, i32) {
    %c0_i32 = arith.constant 0 : i32
    %c0_i32_0 = arith.constant 0 : i32
    %c0_i32_1 = arith.constant 0 : i32
    return %c0_i32, %c0_i32_0 : i32, i32
  }
  func.func @transform_3(%arg0: i32, %arg1: i32) -> (i32, i32) {
    %c0_i32 = arith.constant 0 : i32
    %c0_i32_0 = arith.constant 0 : i32
    return %arg0, %c0_i32 : i32, i32
  }
  func.func @transform_4(%arg0: i32, %arg1: i32) -> (i32, i32) {
    %c0_i32 = arith.constant 0 : i32
    %c0_i32_0 = arith.constant 0 : i32
    %c0_i32_1 = arith.constant 0 : i32
    return %c0_i32, %c0_i32_0 : i32, i32
  }
  func.func @transform_5(%arg0: i32, %arg1: i32) -> (i32, i32) {
    %c0_i32 = arith.constant 0 : i32
    %c0_i32_0 = arith.constant 0 : i32
    %c0_i32_1 = arith.constant 0 : i32
    return %c0_i32, %c0_i32_0 : i32, i32
  }
  func.func @transform_6(%arg0: i32, %arg1: i32) -> (i32, i32) {
    %c0_i32 = arith.constant 0 : i32
    %c0_i32_0 = arith.constant 0 : i32
    return %arg0, %c0_i32 : i32, i32
  }
}

module attributes {stable_mosaic.version = 11 : i64} {
  func.func @_linear_kernel(%arg0: i32, %arg1: i32, %arg2: i32, %arg3: memref<16x64xf32, #tpu.memory_space<vmem>>, %arg4: memref<64x256xbf16, #tpu.memory_space<vmem>>, %arg5: memref<1x256xf32, #tpu.memory_space<vmem>>, %arg6: memref<16x256xf32, #tpu.memory_space<vmem>>, %arg7: memref<16x256xf32, #tpu.memory_space<vmem>>) attributes {dimension_semantics = [#tpu.dimension_semantics<parallel>, #tpu.dimension_semantics<parallel>, #tpu.dimension_semantics<arbitrary>], iteration_bounds = array<i64: 1, 1, 1>, scalar_prefetch = 0 : i64, scratch_operands = 1 : i64, tpu.core_type = #tpu.core_type<tc>, window_params = [{transform_indices = @transform_0, window_bounds = array<i64: 16, 64>}, {transform_indices = @transform_1, window_bounds = array<i64: 64, 256>}, {transform_indices = @transform_2, window_bounds = array<i64: 1, 256>}, {transform_indices = @transform_3, window_bounds = array<i64: 16, 256>}]} {
    %c0_i32 = arith.constant 0 : i32
    %0 = arith.cmpi eq, %arg2, %c0_i32 : i32
    %1 = arith.extui %0 : i1 to i32
    %c0_i32_0 = arith.constant 0 : i32
    %2 = arith.cmpi ne, %1, %c0_i32_0 : i32
    scf.if %2 {
      %cst_10 = arith.constant 0.000000e+00 : f32
      %13 = vector.broadcast %cst_10 : f32 to vector<16x256xf32>
      %c0_11 = arith.constant 0 : index
      %c0_12 = arith.constant 0 : index
      %14 = vector.load %arg7[%c0_11, %c0_12] : memref<16x256xf32, #tpu.memory_space<vmem>>, vector<16x256xf32>
      tpu.vector_store %arg7[%c0_11, %c0_12], %13 {strides = array<i32>} : memref<16x256xf32, #tpu.memory_space<vmem>>, vector<16x256xf32>,
    } else {
    }
    %c0 = arith.constant 0 : index
    %c0_1 = arith.constant 0 : index
    %3 = vector.load %arg7[%c0, %c0_1] : memref<16x256xf32, #tpu.memory_space<vmem>>, vector<16x256xf32>
    %c0_2 = arith.constant 0 : index
    %c0_3 = arith.constant 0 : index
    %4 = vector.load %arg3[%c0_2, %c0_3] : memref<16x64xf32, #tpu.memory_space<vmem>>, vector<16x64xf32>
    %5 = arith.truncf %4 : vector<16x64xf32> to vector<16x64xbf16>
    %c0_4 = arith.constant 0 : index
    %c0_5 = arith.constant 0 : index
    %6 = vector.load %arg4[%c0_4, %c0_5] : memref<64x256xbf16, #tpu.memory_space<vmem>>, vector<64x256xbf16>
    %cst = arith.constant dense<0.000000e+00> : vector<16x256xf32>
    %7 = tpu.matmul %5, %6, %cst {dimension_numbers = #tpu.dot_dimension_numbers<[1], [0], [0], [1], [0, 0, 1, 1], [], []>} : vector<16x64xbf16>, vector<64x256xbf16>, vector<16x256xf32> -> vector<16x256xf32>
    %8 = arith.addf %3, %7 : vector<16x256xf32>
    %c0_6 = arith.constant 0 : index
    %c0_7 = arith.constant 0 : index
    %9 = vector.load %arg7[%c0_6, %c0_7] : memref<16x256xf32, #tpu.memory_space<vmem>>, vector<16x256xf32>
    tpu.vector_store %arg7[%c0_6, %c0_7], %8 {strides = array<i32>} : memref<16x256xf32, #tpu.memory_space<vmem>>, vector<16x256xf32>,
    %c0_i32_8 = arith.constant 0 : i32
    %10 = arith.cmpi eq, %arg2, %c0_i32_8 : i32
    %11 = arith.extui %10 : i1 to i32
    %c0_i32_9 = arith.constant 0 : i32
    %12 = arith.cmpi ne, %11, %c0_i32_9 : i32
    scf.if %12 {
      %c0_10 = arith.constant 0 : index
      %c0_11 = arith.constant 0 : index
      %13 = vector.load %arg7[%c0_10, %c0_11] : memref<16x256xf32, #tpu.memory_space<vmem>>, vector<16x256xf32>
      %c0_12 = arith.constant 0 : index
      %c0_13 = arith.constant 0 : index
      %14 = vector.load %arg5[%c0_12, %c0_13] : memref<1x256xf32, #tpu.memory_space<vmem>>, vector<1x256xf32>
      %15 = vector.broadcast %14 : vector<1x256xf32> to vector<16x256xf32>
      %16 = arith.addf %13, %15 : vector<16x256xf32>
      %cst_14 = arith.constant 5.000000e-01 : f32
      %17 = vector.broadcast %cst_14 : f32 to vector<16x256xf32>
      %18 = arith.mulf %17, %16 : vector<16x256xf32>
      %cst_15 = arith.constant 0.707106769 : f32
      %19 = vector.broadcast %cst_15 : f32 to vector<16x256xf32>
      %20 = arith.mulf %16, %19 : vector<16x256xf32>
      %21 = math.absf %20 : vector<16x256xf32>
      %cst_16 = arith.constant 0.327591091 : f32
      %22 = vector.broadcast %cst_16 : f32 to vector<16x256xf32>
      %23 = arith.mulf %22, %21 : vector<16x256xf32>
      %cst_17 = arith.constant 1.000000e+00 : f32
      %24 = vector.broadcast %cst_17 : f32 to vector<16x256xf32>
      %25 = arith.addf %24, %23 : vector<16x256xf32>
      %cst_18 = arith.constant 1.000000e+00 : f32
      %26 = vector.broadcast %cst_18 : f32 to vector<16x256xf32>
      %27 = arith.divf %26, %25 : vector<16x256xf32>
      %cst_19 = arith.constant 1.06140542 : f32
      %28 = vector.broadcast %cst_19 : f32 to vector<16x256xf32>
      %29 = arith.mulf %28, %27 : vector<16x256xf32>
      %cst_20 = arith.constant -1.45315206 : f32
      %30 = vector.broadcast %cst_20 : f32 to vector<16x256xf32>
      %31 = arith.addf %29, %30 : vector<16x256xf32>
      %32 = arith.mulf %31, %27 : vector<16x256xf32>
      %cst_21 = arith.constant 1.42141378 : f32
      %33 = vector.broadcast %cst_21 : f32 to vector<16x256xf32>
      %34 = arith.addf %32, %33 : vector<16x256xf32>
      %35 = arith.mulf %34, %27 : vector<16x256xf32>
      %cst_22 = arith.constant -0.284496725 : f32
      %36 = vector.broadcast %cst_22 : f32 to vector<16x256xf32>
      %37 = arith.addf %35, %36 : vector<16x256xf32>
      %38 = arith.mulf %37, %27 : vector<16x256xf32>
      %cst_23 = arith.constant 0.254829586 : f32
      %39 = vector.broadcast %cst_23 : f32 to vector<16x256xf32>
      %40 = arith.addf %38, %39 : vector<16x256xf32>
      %41 = arith.mulf %40, %27 : vector<16x256xf32>
      %cst_24 = arith.constant 0.000000e+00 : f32
      %42 = vector.broadcast %cst_24 : f32 to vector<16x256xf32>
      %43 = arith.subf %42, %21 : vector<16x256xf32>
      %44 = arith.mulf %43, %21 : vector<16x256xf32>
      %45 = math.exp %44 : vector<16x256xf32>
      %46 = arith.mulf %41, %45 : vector<16x256xf32>
      %cst_25 = arith.constant 1.000000e+00 : f32
      %47 = vector.broadcast %cst_25 : f32 to vector<16x256xf32>
      %48 = arith.subf %47, %46 : vector<16x256xf32>
      %cst_26 = arith.constant 0.000000e+00 : f32
      %49 = vector.broadcast %cst_26 : f32 to vector<16x256xf32>
      %50 = arith.cmpf olt, %20, %49 : vector<16x256xf32>
      %cst_27 = arith.constant 0.000000e+00 : f32
      %51 = vector.broadcast %cst_27 : f32 to vector<16x256xf32>
      %52 = arith.subf %51, %48 : vector<16x256xf32>
      %53 = arith.select %50, %52, %48 : vector<16x256xi1>, vector<16x256xf32>
      %cst_28 = arith.constant 1.000000e+00 : f32
      %54 = vector.broadcast %cst_28 : f32 to vector<16x256xf32>
      %55 = arith.addf %54, %53 : vector<16x256xf32>
      %56 = arith.mulf %18, %55 : vector<16x256xf32>
      %c0_29 = arith.constant 0 : index
      %c0_30 = arith.constant 0 : index
      %57 = vector.load %arg6[%c0_29, %c0_30] : memref<16x256xf32, #tpu.memory_space<vmem>>, vector<16x256xf32>
      tpu.vector_store %arg6[%c0_29, %c0_30], %56 {strides = array<i32>} : memref<16x256xf32, #tpu.memory_space<vmem>>, vector<16x256xf32>,
    } else {
    }
    return
  }
  func.func @transform_0(%arg0: i32, %arg1: i32, %arg2: i32) -> (i32, i32) {
    %c0_i32 = arith.constant 0 : i32
    return %arg0, %arg2 : i32, i32
  }
  func.func @transform_1(%arg0: i32, %arg1: i32, %arg2: i32) -> (i32, i32) {
    %c0_i32 = arith.constant 0 : i32
    return %arg2, %arg1 : i32, i32
  }
  func.func @transform_2(%arg0: i32, %arg1: i32, %arg2: i32) -> (i32, i32) {
    %c0_i32 = arith.constant 0 : i32
    %c0_i32_0 = arith.constant 0 : i32
    return %c0_i32, %arg1 : i32, i32
  }
  func.func @transform_3(%arg0: i32, %arg1: i32, %arg2: i32) -> (i32, i32) {
    %c0_i32 = arith.constant 0 : i32
    return %arg0, %arg1 : i32, i32
  }
}

module attributes {stable_mosaic.version = 11 : i64} {
  func.func @_ln_kernel(%arg0: i32, %arg1: memref<16x64xf32, #tpu.memory_space<vmem>>, %arg2: memref<1x64xf32, #tpu.memory_space<vmem>>, %arg3: memref<1x64xf32, #tpu.memory_space<vmem>>, %arg4: memref<16x64xf32, #tpu.memory_space<vmem>>) attributes {dimension_semantics = [#tpu.dimension_semantics<parallel>], iteration_bounds = array<i64: 1>, scalar_prefetch = 0 : i64, scratch_operands = 0 : i64, tpu.core_type = #tpu.core_type<tc>, window_params = [{transform_indices = @transform_0, window_bounds = array<i64: 16, 64>}, {pipeline_mode = #tpu.pipeline_mode<synchronous>, transform_indices = @transform_1, window_bounds = array<i64: 1, 64>}, {pipeline_mode = #tpu.pipeline_mode<synchronous>, transform_indices = @transform_2, window_bounds = array<i64: 1, 64>}, {transform_indices = @transform_3, window_bounds = array<i64: 16, 64>}]} {
    %c0 = arith.constant 0 : index
    %c0_0 = arith.constant 0 : index
    %0 = vector.load %arg1[%c0, %c0_0] : memref<16x64xf32, #tpu.memory_space<vmem>>, vector<16x64xf32>
    %cst = arith.constant dense<0.000000e+00> : vector<16xf32>
    %1 = vector.multi_reduction <add>, %0, %cst [1] : vector<16x64xf32> to vector<16xf32>
    %2 = vector.shape_cast %1 : vector<16xf32> to vector<16x1xf32>
    %cst_1 = arith.constant 6.400000e+01 : f32
    %3 = vector.broadcast %cst_1 : f32 to vector<16x1xf32>
    %4 = arith.divf %2, %3 : vector<16x1xf32>
    %5 = vector.broadcast %4 : vector<16x1xf32> to vector<16x64xf32>
    %6 = arith.subf %0, %5 : vector<16x64xf32>
    %7 = arith.mulf %6, %6 : vector<16x64xf32>
    %cst_2 = arith.constant dense<0.000000e+00> : vector<16xf32>
    %8 = vector.multi_reduction <add>, %7, %cst_2 [1] : vector<16x64xf32> to vector<16xf32>
    %9 = vector.shape_cast %8 : vector<16xf32> to vector<16x1xf32>
    %cst_3 = arith.constant 6.400000e+01 : f32
    %10 = vector.broadcast %cst_3 : f32 to vector<16x1xf32>
    %11 = arith.divf %9, %10 : vector<16x1xf32>
    %12 = vector.broadcast %4 : vector<16x1xf32> to vector<16x64xf32>
    %13 = arith.subf %0, %12 : vector<16x64xf32>
    %cst_4 = arith.constant 9.99999974E-6 : f32
    %14 = vector.broadcast %cst_4 : f32 to vector<16x1xf32>
    %15 = arith.addf %11, %14 : vector<16x1xf32>
    %16 = math.rsqrt %15 : vector<16x1xf32>
    %17 = vector.broadcast %16 : vector<16x1xf32> to vector<16x64xf32>
    %18 = arith.mulf %13, %17 : vector<16x64xf32>
    %c0_5 = arith.constant 0 : index
    %c0_6 = arith.constant 0 : index
    %19 = vector.load %arg2[%c0_5, %c0_6] : memref<1x64xf32, #tpu.memory_space<vmem>>, vector<1x64xf32>
    %20 = vector.broadcast %19 : vector<1x64xf32> to vector<16x64xf32>
    %21 = arith.mulf %18, %20 : vector<16x64xf32>
    %c0_7 = arith.constant 0 : index
    %c0_8 = arith.constant 0 : index
    %22 = vector.load %arg3[%c0_7, %c0_8] : memref<1x64xf32, #tpu.memory_space<vmem>>, vector<1x64xf32>
    %23 = vector.broadcast %22 : vector<1x64xf32> to vector<16x64xf32>
    %24 = arith.addf %21, %23 : vector<16x64xf32>
    %c0_9 = arith.constant 0 : index
    %c0_10 = arith.constant 0 : index
    %25 = vector.load %arg4[%c0_9, %c0_10] : memref<16x64xf32, #tpu.memory_space<vmem>>, vector<16x64xf32>
    tpu.vector_store %arg4[%c0_9, %c0_10], %24 {strides = array<i32>} : memref<16x64xf32, #tpu.memory_space<vmem>>, vector<16x64xf32>,
    return
  }
  func.func @transform_0(%arg0: i32) -> (i32, i32) {
    %c0_i32 = arith.constant 0 : i32
    %c0_i32_0 = arith.constant 0 : i32
    return %arg0, %c0_i32 : i32, i32
  }
  func.func @transform_1(%arg0: i32) -> (i32, i32) {
    %c0_i32 = arith.constant 0 : i32
    %c0_i32_0 = arith.constant 0 : i32
    %c0_i32_1 = arith.constant 0 : i32
    return %c0_i32, %c0_i32_0 : i32, i32
  }
  func.func @transform_2(%arg0: i32) -> (i32, i32) {
    %c0_i32 = arith.constant 0 : i32
    %c0_i32_0 = arith.constant 0 : i32
    %c0_i32_1 = arith.constant 0 : i32
    return %c0_i32, %c0_i32_0 : i32, i32
  }
  func.func @transform_3(%arg0: i32) -> (i32, i32) {
    %c0_i32 = arith.constant 0 : i32
    %c0_i32_0 = arith.constant 0 : i32
    return %arg0, %c0_i32 : i32, i32
  }
}

module attributes {stable_mosaic.version = 11 : i64} {
  func.func @_matmul_nt_kernel(%arg0: i32, %arg1: i32, %arg2: i32, %arg3: memref<16x64xf32, #tpu.memory_space<vmem>>, %arg4: memref<128x64xbf16, #tpu.memory_space<vmem>>, %arg5: memref<16x128xf32, #tpu.memory_space<vmem>>, %arg6: memref<16x128xf32, #tpu.memory_space<vmem>>) attributes {dimension_semantics = [#tpu.dimension_semantics<parallel>, #tpu.dimension_semantics<parallel>, #tpu.dimension_semantics<arbitrary>], iteration_bounds = array<i64: 1, 1, 1>, scalar_prefetch = 0 : i64, scratch_operands = 1 : i64, tpu.core_type = #tpu.core_type<tc>, window_params = [{transform_indices = @transform_0, window_bounds = array<i64: 16, 64>}, {transform_indices = @transform_1, window_bounds = array<i64: 128, 64>}, {transform_indices = @transform_2, window_bounds = array<i64: 16, 128>}]} {
    %c0_i32 = arith.constant 0 : i32
    %0 = arith.cmpi eq, %arg2, %c0_i32 : i32
    %1 = arith.extui %0 : i1 to i32
    %c0_i32_0 = arith.constant 0 : i32
    %2 = arith.cmpi ne, %1, %c0_i32_0 : i32
    scf.if %2 {
      %cst_10 = arith.constant 0.000000e+00 : f32
      %13 = vector.broadcast %cst_10 : f32 to vector<16x128xf32>
      %c0_11 = arith.constant 0 : index
      %c0_12 = arith.constant 0 : index
      %14 = vector.load %arg6[%c0_11, %c0_12] : memref<16x128xf32, #tpu.memory_space<vmem>>, vector<16x128xf32>
      tpu.vector_store %arg6[%c0_11, %c0_12], %13 {strides = array<i32>} : memref<16x128xf32, #tpu.memory_space<vmem>>, vector<16x128xf32>,
    } else {
    }
    %c0 = arith.constant 0 : index
    %c0_1 = arith.constant 0 : index
    %3 = vector.load %arg6[%c0, %c0_1] : memref<16x128xf32, #tpu.memory_space<vmem>>, vector<16x128xf32>
    %c0_2 = arith.constant 0 : index
    %c0_3 = arith.constant 0 : index
    %4 = vector.load %arg3[%c0_2, %c0_3] : memref<16x64xf32, #tpu.memory_space<vmem>>, vector<16x64xf32>
    %5 = arith.truncf %4 : vector<16x64xf32> to vector<16x64xbf16>
    %c0_4 = arith.constant 0 : index
    %c0_5 = arith.constant 0 : index
    %6 = vector.load %arg4[%c0_4, %c0_5] : memref<128x64xbf16, #tpu.memory_space<vmem>>, vector<128x64xbf16>
    %cst = arith.constant dense<0.000000e+00> : vector<16x128xf32>
    %7 = tpu.matmul %5, %6, %cst {dimension_numbers = #tpu.dot_dimension_numbers<[1], [1], [0], [0], [0, 0, 1, 0], [], []>} : vector<16x64xbf16>, vector<128x64xbf16>, vector<16x128xf32> -> vector<16x128xf32>
    %8 = arith.addf %3, %7 : vector<16x128xf32>
    %c0_6 = arith.constant 0 : index
    %c0_7 = arith.constant 0 : index
    %9 = vector.load %arg6[%c0_6, %c0_7] : memref<16x128xf32, #tpu.memory_space<vmem>>, vector<16x128xf32>
    tpu.vector_store %arg6[%c0_6, %c0_7], %8 {strides = array<i32>} : memref<16x128xf32, #tpu.memory_space<vmem>>, vector<16x128xf32>,
    %c0_i32_8 = arith.constant 0 : i32
    %10 = arith.cmpi eq, %arg2, %c0_i32_8 : i32
    %11 = arith.extui %10 : i1 to i32
    %c0_i32_9 = arith.constant 0 : i32
    %12 = arith.cmpi ne, %11, %c0_i32_9 : i32
    scf.if %12 {
      %c0_10 = arith.constant 0 : index
      %c0_11 = arith.constant 0 : index
      %13 = vector.load %arg6[%c0_10, %c0_11] : memref<16x128xf32, #tpu.memory_space<vmem>>, vector<16x128xf32>
      %c0_12 = arith.constant 0 : index
      %c0_13 = arith.constant 0 : index
      %14 = vector.load %arg5[%c0_12, %c0_13] : memref<16x128xf32, #tpu.memory_space<vmem>>, vector<16x128xf32>
      tpu.vector_store %arg5[%c0_12, %c0_13], %13 {strides = array<i32>} : memref<16x128xf32, #tpu.memory_space<vmem>>, vector<16x128xf32>,
    } else {
    }
    return
  }
  func.func @transform_0(%arg0: i32, %arg1: i32, %arg2: i32) -> (i32, i32) {
    %c0_i32 = arith.constant 0 : i32
    return %arg0, %arg2 : i32, i32
  }
  func.func @transform_1(%arg0: i32, %arg1: i32, %arg2: i32) -> (i32, i32) {
    %c0_i32 = arith.constant 0 : i32
    return %arg1, %arg2 : i32, i32
  }
  func.func @transform_2(%arg0: i32, %arg1: i32, %arg2: i32) -> (i32, i32) {
    %c0_i32 = arith.constant 0 : i32
    return %arg0, %arg1 : i32, i32
  }
}

</mosaic_0001>

<bundles_post_ra>
// kernel: decoder_only_transformer.20
= control target key start
LH: loop header
LB: loop body
LE: loop exit
PB: predicated region body
PF: predicated region fallthrough
CT: control target
= control target key end

     0   :  { %vm20_vm0 = vcmask 523264   ;;  %v188_v1 = vmov 0   ;;  %v189_v2 = vmov 0.0   ;;  %v143_v13 = vlaneseq  ;;  %s262_s1 = inlined_call_operand.vmem [shape: bf16[64,192], index: 1, kind: input, shape index: {}]   ;;  %s263_s0 = inlined_call_operand.vmem [shape: f32[16,64], index: 0, kind: input, shape index: {}]   ;;  %s264_s2 = inlined_call_operand.vmem [shape: f32[1,192], index: 2, kind: input, shape index: {}]   ;;  %s265_s3 = inlined_call_operand.vmem [shape: f32[16,192], index: 3, kind: output, shape index: {}]  }
   0x1   :  { %v176_v0 = vld [vmem:[%s262_s1 + $0x34] ss:$8 sps:$4 sm:$0xff]   ;;  %115 = vmatprep.mubr.bf16.mxu0 %v188_v1  ;;  %21 = vst.msk [vmem:[#allocation2 + $0x8] sm:$0xff] %vm20_vm0, %v189_v2  ;;  %23 = vst.msk [vmem:[#allocation2 + $0x18] sm:$0xff] %vm20_vm0, %v189_v2  ;;  %v178_v3 = vld [vmem:[%s262_s1 + $0x30] ss:$8 sps:$4 sm:$0xff]  }
   0x2   :  { %91 = vmatprep.subr.bf16.mxu0 %v176_v0  ;;  %v179_v4 = vld [vmem:[%s262_s1 + $0x24] ss:$8 sps:$4 sm:$0xff]   ;;  %v181_v5 = vld [vmem:[%s262_s1 + $0x20] ss:$8 sps:$4 sm:$0xff]   ;;  %v182_v6 = vld [vmem:[%s262_s1 + $0x14] ss:$8 sps:$4 sm:$0xff]  }
   0x3   :  { %92 = vmatpush1.bf16.msra.mxu0 %v178_v3  ;;  %v184_v7 = vld [vmem:[%s262_s1 + $0x10] ss:$8 sps:$4 sm:$0xff]   ;;  %v185_v8 = vld [vmem:[%s262_s1 + $0x4] ss:$8 sps:$4 sm:$0xff]   ;;  %v187_v9 = vld [vmem:[%s262_s1] ss:$8 sps:$4 sm:$0xff]  }
   0x4   :  { %93 = vmatprep.subr.bf16.mxu0 %v179_v4  ;;  %v28_v10 = vld [vmem:[%s263_s0] sm:$0xff]  ;;  %v29_v11 = vld [vmem:[%s263_s0 + $0x8] sm:$0xff]  ;;  %v144_v14 = vshrl.u32 %v143_v13, 7 }
   0x5   :  { %v30_v12 = vpack.c.bf16 %v29_v11, %v28_v10  ;;  %v141_v16 = vld [vmem:[%s264_s2] sm:$0x3] }
   0x6   :  { %v145_v15 = vsub.s32 0, %v144_v14  ;;  %v149_v25 = vsub.s32 1, %v144_v14 }
   0x7   :  { %94 = vmatpush1.bf16.msra.mxu0 %v181_v5 }
   0x8   :  { %95 = vmatprep.subr.bf16.mxu0 %v182_v6  ;;  %v146_v17 = vrot.slane %v141_v16, %v145_v15  ;;  %v25_v19 = vld [vmem:[#allocation2 + $0x8] sm:$0xff]  ;;  %v27_v24 = vld [vmem:[#allocation2 + $0x18] sm:$0xff]  ;;  %v150_v29 = vrot.slane %v141_v16, %v149_v25 }
   0xb   :  { %96 = vmatpush1.bf16.msra.mxu0 %v184_v7 }
   0xc   :  { %97 = vmatprep.subr.bf16.mxu0 %v185_v8 }
   0xf   :  { %98 = vmatpush1.bf16.msra.mxu0 %v187_v9 }
  0x12   :  { %173 = vmatmul.mubr.msk.bf16.vlgmr.msra.gmra.mxu0 %vm20_vm0, %v30_v12 }
  0xd2   :  { %v117_v18 = vpop.f32.mrf.mxu0 }
  0xd3   :  { %v153_v21 = vadd.f32 %v146_v17, %v117_v18 }
  0xd4   :  { %v119_v20 = vpop.f32.mrf.mxu0 }
  0xd5   :  { %v127_v22 = vadd.f32 %v119_v20, %v25_v19  ;;  %157 = vst [vmem:[%s265_s3] sm:$0xff] %v153_v21 }
  0xd6   :  { %v121_v23 = vpop.f32.mrf.mxu0 }
  0xd7   :  { %131 = vst.msk [vmem:[#allocation2 + $0x8] sm:$0xff] %vm20_vm0, %v127_v22  ;;  %v155_v27 = vadd.f32 %v146_v17, %v121_v23 }
  0xd8   :  { %v123_v26 = vpop.f32.mrf.mxu0 }
  0xd9   :  { %v129_v28 = vadd.f32 %v123_v26, %v27_v24  ;;  %159 = vst [vmem:[%s265_s3 + $0x10] sm:$0xff] %v155_v27 }
  0xdb   :  { %133 = vst.msk [vmem:[#allocation2 + $0x18] sm:$0xff] %vm20_vm0, %v129_v28 }
  0xde   :  { %v138_v30 = vld [vmem:[#allocation2 + $0x8] sm:$0xff] }
  0xdf   :  { %v154_v31 = vadd.f32 %v150_v29, %v138_v30 }
  0xe1   :  { %158 = vst.msk [vmem:[%s265_s3 + $0x8] sm:$0xff] %vm20_vm0, %v154_v31 }
  0xe2   :  { %v140_v32 = vld [vmem:[#allocation2 + $0x18] sm:$0xff] }
  0xe3   :  { %v156_v33 = vadd.f32 %v150_v29, %v140_v32 }
  0xe5   :  { %160 = vst.msk [vmem:[%s265_s3 + $0x18] sm:$0xff] %vm20_vm0, %v156_v33 }

// kernel: decoder_only_transformer.22
= control target key start
LH: loop header
LB: loop body
LE: loop exit
PB: predicated region body
PF: predicated region fallthrough
CT: control target
= control target key end

     0   :  { %vm28_vm0 = vcmask 523264   ;;  %v221_v0 = vmov 0.0   ;;  %vm222_vm1 = vmmov 0   ;;  %s308_s1 = inlined_call_operand.vmem [shape: bf16[64,64], index: 1, kind: input, shape index: {}]   ;;  %s309_s0 = inlined_call_operand.vmem [shape: f32[16,64], index: 0, kind: input, shape index: {}]   ;;  %s310_s2 = inlined_call_operand.vmem [shape: f32[1,64], index: 2, kind: input, shape index: {}]   ;;  %s311_s3 = inlined_call_operand.vmem [shape: f32[16,64], index: 3, kind: input, shape index: {}]   ;;  %s312_s4 = inlined_call_operand.vmem [shape: f32[1,64], index: 4, kind: input, shape index: {}]   ;;  %s313_s5 = inlined_call_operand.vmem [shape: f32[1,64], index: 5, kind: input, shape index: {}]   ;;  %s314_s6 = inlined_call_operand.vmem [shape: f32[16,64], index: 6, kind: output, shape index: {}]  }
   0x1   :  { %199 = vmatprep.subr.bf16.mxu0 %v221_v0  ;;  %v213_v1 = vld [vmem:[%s308_s1 + $0x18] sm:$0xff]   ;;  %207 = vmatprep.mubr.msk.bf16.mxu0 %vm222_vm1, %v221_v0  ;;  %29 = vst.msk [vmem:[#allocation2] sm:$0xff] %vm28_vm0, %v221_v0  ;;  %30 = vst.msk [vmem:[#allocation2 + $0x8] sm:$0xff] %vm28_vm0, %v221_v0  ;;  %v214_v2 = vld [vmem:[%s308_s1 + $0x10] sm:$0xff]  }
   0x2   :  { %200 = vmatpush3.bf16.msra.mxu0 %v213_v1  ;;  %v215_v3 = vld [vmem:[%s308_s1 + $0x8] sm:$0xff]   ;;  %v216_v4 = vld [vmem:[%s308_s1] sm:$0xff]  }
   0x3   :  { %201 = vmatprep.subr.bf16.mxu0 %v221_v0  ;;  %v33_v5 = vld [vmem:[%s309_s0] sm:$0xff]  ;;  %v34_v6 = vld [vmem:[%s309_s0 + $0x8] sm:$0xff] }
   0x4   :  { %v35_v7 = vpack.c.bf16 %v34_v6, %v33_v5  ;;  %v191_v16 = vld [vmem:[%s310_s2] ss:$0 sm:$0xff]  ;;  %v132_v22 = vld [vmem:[%s311_s3 + $0x8] sm:$0xff] }
   0x5   :  { %v131_v18 = vld [vmem:[%s311_s3] sm:$0xff] }
   0x6   :  { %202 = vmatpush3.bf16.msra.mxu0 %v214_v2  ;;  %v192_v44 = vld [vmem:[%s312_s4] ss:$0 sm:$0xff] }
   0x7   :  { %203 = vmatprep.subr.bf16.mxu0 %v221_v0  ;;  %v193_v46 = vld [vmem:[%s313_s5] ss:$0 sm:$0xff] }
   0x8   :  { %v31_v8 = vld [vmem:[#allocation2] sm:$0xff]  ;;  %v32_v12 = vld [vmem:[#allocation2 + $0x8] sm:$0xff] }
   0xa   :  { %204 = vmatpush3.bf16.msra.mxu0 %v215_v3 }
   0xb   :  { %205 = vmatprep.subr.bf16.mxu0 %v221_v0 }
   0xe   :  { %206 = vmatpush3.bf16.msra.mxu0 %v216_v4 }
  0x11   :  { %208 = vmatmul.mubr.msk.bf16.vlgmr.msra.gmra.mxu0 %vm28_vm0, %v35_v7 }
  0xd1   :  { %v106_v9 = vpop.f32.mrf.mxu0 }
  0xd2   :  { %v113_v10 = vadd.f32 %v106_v9, %v31_v8 }
  0xd3   :  { %v209_v11 = vpop.f32.mrf.mxu0 }
  0xd4   :  { %115 = vst.msk [vmem:[#allocation2] sm:$0xff] %vm28_vm0, %v113_v10 }
  0xd5   :  { %v109_v13 = vpop.f32.mrf.mxu0 }
  0xd6   :  { %v114_v14 = vadd.f32 %v109_v13, %v32_v12 }
  0xd7   :  { %v210_v15 = vpop.f32.mrf.mxu0 }
  0xd8   :  { %116 = vst.msk [vmem:[#allocation2 + $0x8] sm:$0xff] %vm28_vm0, %v114_v14 }
  0xdb   :  { %v120_v17 = vld [vmem:[#allocation2] sm:$0xff] }
  0xdc   :  { %v129_v19 = vadd.f32 %v191_v16, %v120_v17 }
  0xde   :  { %v133_v20 = vadd.f32 %v131_v18, %v129_v19 }
  0xdf   :  { %v121_v21 = vld [vmem:[#allocation2 + $0x8] sm:$0xff] }
  0xe0   :  { %v135_v23 = vsel %vm28_vm0, %v133_v20, 0.0  ;;  %v130_v24 = vadd.f32 %v191_v16, %v121_v21 }
  0xe1   :  { %136 = vadd.xlane.f32.xlu0 %v135_v23 }
  0xe2   :  { %v134_v25 = vadd.f32 %v132_v22, %v130_v24 }
  0xe4   :  { %v138_v26 = vsel %vm28_vm0, %v134_v25, 0.0 }
  0xe5   :  { %139 = vadd.xlane.f32.xlu0 %v138_v26 }
 0x16a   :  { %v137_v27 = vpop.xlane.xlu0 %136 }
 0x16b   :  { %v142_v28 = vmul.f32 0.015625, %v137_v27 }
 0x16d   :  { %v144_v29 = vsub.f32 %v133_v20, %v142_v28 }
 0x16e   :  { %v140_v30 = vpop.xlane.xlu0 %139 }
 0x16f   :  { %v143_v31 = vmul.f32 0.015625, %v140_v30  ;;  %v146_v32 = vmul.f32 %v144_v29, %v144_v29 }
 0x171   :  { %v145_v33 = vsub.f32 %v134_v25, %v143_v31  ;;  %v148_v34 = vsel %vm28_vm0, %v146_v32, 0.0 }
 0x172   :  { %149 = vadd.xlane.f32.xlu1 %v148_v34 }
 0x173   :  { %v147_v35 = vmul.f32 %v145_v33, %v145_v33 }
 0x175   :  { %v151_v36 = vsel %vm28_vm0, %v147_v35, 0.0 }
 0x176   :  { %152 = vadd.xlane.f32.xlu1 %v151_v36 }
 0x1fb   :  { %v150_v37 = vpop.xlane.xlu1 %149 }
 0x1fc   :  { %v154_v38 = vmul.f32 0.015625, %v150_v37 }
 0x1fe   :  { %v156_v39 = vadd.f32 1e-05, %v154_v38 }
 0x1ff   :  { %v153_v40 = vpop.xlane.xlu1 %152 }
 0x200   :  { %217 = vrsqrt.f32 %v156_v39  ;;  %v155_v41 = vmul.f32 0.015625, %v153_v40 }
 0x202   :  { %v157_v42 = vadd.f32 1e-05, %v155_v41 }
 0x204   :  { %219 = vrsqrt.f32 %v157_v42 }
 0x20d   :  { %v218_v43 = vpop.eup %217 }
 0x20e   :  { %v160_v45 = vmul.f32 %v218_v43, %v144_v29 }
 0x210   :  { %v169_v47 = vmul.f32 %v192_v44, %v160_v45 }
 0x211   :  { %v220_v48 = vpop.eup %219 }
 0x212   :  { %v178_v49 = vadd.f32 %v193_v46, %v169_v47  ;;  %v161_v50 = vmul.f32 %v220_v48, %v145_v33 }
 0x214   :  { %180 = vst.msk [vmem:[%s314_s6] sm:$0xff] %vm28_vm0, %v178_v49  ;;  %v170_v51 = vmul.f32 %v192_v44, %v161_v50 }
 0x216   :  { %v179_v52 = vadd.f32 %v193_v46, %v170_v51 }
 0x218   :  { %181 = vst.msk [vmem:[%s314_s6 + $0x8] sm:$0xff] %vm28_vm0, %v179_v52 }

// kernel: decoder_only_transformer.21
= control target key start
LH: loop header
LB: loop body
LE: loop exit
PB: predicated region body
PF: predicated region fallthrough
CT: control target
= control target key end

     0   :  { %s891_s12 = smov 0   ;;  %s968_s0 = inlined_call_operand.vmem [shape: f32[8,4,2,16], index: 0, kind: input, shape index: {}]   ;;  %s969_s1 = inlined_call_operand.vmem [shape: f32[8,4,2,16], index: 1, kind: input, shape index: {}]   ;;  %s970_s2 = inlined_call_operand.vmem [shape: f32[8,4,2,16], index: 2, kind: input, shape index: {}]   ;;  %s971_s3 = inlined_call_operand.vmem [shape: f32[8,4,2,16], index: 3, kind: output, shape index: {}]  }
   0x1 LB: > { %s744_s13 = sadd.s32 4294967295, %s867_s12   ;;  %p748_p0 = scmp.ge.s32.totalorder %s867_s12, 1  ;;  %s867_s12 = sphi %s891_s12, %s13_s12  }
   0x2   : > { %p157_p1 = scmp.lt.s32.totalorder %s867_s12, 9 }
   0x4   : > { %p158_p2 = pnand %p748_p0, %p157_p1 }
   0x5   : > { %p191_p3 = scmp.lt.s32.totalorder (!%p158_p2), %s744_s13, 7 }
   0x6   : > { %161 = sbr.rel (%p158_p2) target bundleno = 743 (0x2e7), region = 32 }
   0xb   : > { %v869_v0 = vmov 0.0   ;;  %s973_s13 = smov (!%p191_p3, %s744_s13), 7  ;;  %vm870_vm0 = vmmov 0   ;;  %vm240_vm1 = vcmask 130048   ;;  %vm425_vm2 = vcmask 9216  }
   0xc   : > { %787 = vmatprep.subr.bf16.mxu0 %v869_v0  ;;  %793 = vmatprep.subr.bf16.mxu1 %v869_v0  ;;  %s905_s14 = sshll.u32 %s973_s13, 3  ;;  %vm478_vm3 = vcmask 1040384   ;;  %vm474_vm4 = vcmask 15360   ;;  %vm660_vm5 = vcmask 123904  }
   0xd   : > { %789 = vmatprep.mubr.msk.bf16.mxu0 %vm870_vm0, %v869_v0  ;;  %795 = vmatprep.mubr.msk.bf16.mxu1 %vm870_vm0, %v869_v0  ;;  %s200_s17 = scalar_lea.vmem %s969_s1, %s905_s14  ;;  %s195_s20 = scalar_lea.vmem %s968_s0, %s905_s14 }
   0xe   : > { %v224_v1 = vld [vmem:[%s200_s17] sm:$0x3]  ;;  %v225_v2 = vld [vmem:[%s200_s17 + $0x2] sm:$0x3]  ;;  %v226_v7 = vld [vmem:[%s200_s17 + $0x4] sm:$0x3]  ;;  %s205_s23 = scalar_lea.vmem %s970_s2, %s905_s14  ;;  %s210_s26 = scalar_lea.vmem %s971_s3, %s905_s14 }
   0xf   : > { %v212_v3 = vld [vmem:[%s195_s20] sm:$0x3]  ;;  %v228_v4 = vpack.c.bf16 %v224_v1, %v224_v1  ;;  %v229_v5 = vpack.c.bf16 %v225_v2, %v225_v2  ;;  %v213_v6 = vld [vmem:[%s195_s20 + $0x2] sm:$0x3]  ;;  %v227_v8 = vld [vmem:[%s200_s17 + $0x6] sm:$0x3]  ;;  %v230_v13 = vpack.c.bf16 %v226_v7, %v226_v7 }
  0x10   : > { %v216_v11 = vmul.f32 0.25, %v212_v3  ;;  %v217_v12 = vmul.f32 0.25, %v213_v6  ;;  %v231_v14 = vpack.c.bf16 %v227_v8, %v227_v8  ;;  %v214_v17 = vld [vmem:[%s195_s20 + $0x4] sm:$0x3]  ;;  %v215_v18 = vld [vmem:[%s195_s20 + $0x6] sm:$0x3] }
  0x11   : > { %v245_v9 = vsel %vm240_vm1, %v228_v4, 0  ;;  %v291_v10 = vsel %vm240_vm1, %v229_v5, 0  ;;  %v337_v19 = vsel %vm240_vm1, %v230_v13, 0  ;;  %v218_v21 = vmul.f32 0.25, %v214_v17  ;;  %v232_v2 = vld [vmem:[%s205_s23] sm:$0x3] }
  0x12   : > { %788 = vmatpush3.bf16.xpose.msra.mxu0 %v245_v9  ;;  %794 = vmatpush3.bf16.xpose.msra.mxu1 %v291_v10  ;;  %v220_v15 = vpack.c.bf16 %v216_v11, %v216_v11  ;;  %v221_v16 = vpack.c.bf16 %v217_v12, %v217_v12  ;;  %v383_v20 = vsel %vm240_vm1, %v231_v14, 0  ;;  %v219_v22 = vmul.f32 0.25, %v215_v18  ;;  %v233_v4 = vld [vmem:[%s205_s23 + $0x2] sm:$0x3]  ;;  %v234_v8 = vld [vmem:[%s205_s23 + $0x4] sm:$0x3] }
  0x13   : > { %799 = vmatprep.subr.bf16.mxu0 %v869_v0  ;;  %805 = vmatprep.subr.bf16.mxu1 %v869_v0  ;;  %v222_v23 = vpack.c.bf16 %v218_v21, %v218_v21  ;;  %v236_v3 = vpack.c.bf16 %v232_v2, %v232_v2  ;;  %v237_v5 = vpack.c.bf16 %v233_v4, %v233_v4  ;;  %v235_v11 = vld [vmem:[%s205_s23 + $0x6] sm:$0x3] }
  0x14   : > { %v223_v24 = vpack.c.bf16 %v219_v22, %v219_v22  ;;  %v238_v9 = vpack.c.bf16 %v234_v8, %v234_v8  ;;  %v239_v12 = vpack.c.bf16 %v235_v11, %v235_v11 }
  0x15   : > { %v480_v6 = vsel %vm478_vm3, %v236_v3, 0  ;;  %v526_v7 = vsel %vm478_vm3, %v237_v5, 0 }
  0x16   : > { %v572_v10 = vsel %vm478_vm3, %v238_v9, 0  ;;  %v618_v13 = vsel %vm478_vm3, %v239_v12, 0 }
  0x19   : > { %790 = vmatmul.mubr.msk.bf16.vlgmr.msra.gmra.mxu0 %vm240_vm1, %v220_v15  ;;  %796 = vmatmul.mubr.msk.bf16.vlgmr.msra.gmra.mxu1 %vm240_vm1, %v221_v16 }
  0x1a   : > { %800 = vmatpush3.bf16.xpose.msra.mxu0 %v337_v19  ;;  %806 = vmatpush3.bf16.xpose.msra.mxu1 %v383_v20 }
  0x1b   : > { %801 = vmatprep.mubr.msk.bf16.mxu0 %vm870_vm0, %v869_v0  ;;  %807 = vmatprep.mubr.msk.bf16.mxu1 %vm870_vm0, %v869_v0 }
  0x1c   : > { %811 = vmatprep.subr.bf16.mxu0 %v869_v0  ;;  %817 = vmatprep.subr.bf16.mxu1 %v869_v0 }
  0x21   : > { %802 = vmatmul.mubr.msk.bf16.vlgmr.msra.gmra.mxu0 %vm240_vm1, %v222_v23  ;;  %808 = vmatmul.mubr.msk.bf16.vlgmr.msra.gmra.mxu1 %vm240_vm1, %v223_v24 }
  0x22   : > { %813 = vmatprep.mubr.msk.bf16.mxu0 %vm870_vm0, %v869_v0  ;;  %819 = vmatprep.mubr.msk.bf16.mxu1 %vm870_vm0, %v869_v0 }
  0x23   : > { %812 = vmatpush3.bf16.msra.mxu0 %v480_v6  ;;  %818 = vmatpush3.bf16.msra.mxu1 %v526_v7 }
  0x24   : > { %823 = vmatprep.subr.bf16.mxu0 %v869_v0  ;;  %829 = vmatprep.subr.bf16.mxu1 %v869_v0 }
  0xd9   : > { %v281_v25 = vpop.f32.mrf.mxu0  ;;  %v327_v26 = vpop.f32.mrf.mxu1 }
  0xda   : > { %v426_v27 = vsel %vm425_vm2, %v281_v25, -inf  ;;  %v429_v30 = vsel %vm425_vm2, %v327_v26, -inf }
  0xdb   : > { %v797_v28 = vpop.f32.mrf.mxu1  ;;  %427 = vmax.xlane.f32.xlu0 %v426_v27  ;;  %v791_v29 = vpop.f32.mrf.mxu0 }
  0xdd   : > { %v284_v31 = vpop.f32.mrf.mxu0  ;;  %v330_v32 = vpop.f32.mrf.mxu1 }
  0xdf   : > { %v798_v33 = vpop.f32.mrf.mxu1  ;;  %430 = vmax.xlane.f32.xlu0 %v429_v30  ;;  %v792_v34 = vpop.f32.mrf.mxu0 }
  0xe1   : > { %v373_v35 = vpop.f32.mrf.mxu0  ;;  %v419_v36 = vpop.f32.mrf.mxu1 }
  0xe2   : > { %v432_v37 = vsel %vm425_vm2, %v373_v35, -inf  ;;  %v435_v40 = vsel %vm425_vm2, %v419_v36, -inf }
  0xe3   : > { %v809_v38 = vpop.f32.mrf.mxu1  ;;  %433 = vmax.xlane.f32.xlu1 %v432_v37  ;;  %v803_v39 = vpop.f32.mrf.mxu0 }
  0xe5   : > { %v376_v41 = vpop.f32.mrf.mxu0  ;;  %v422_v42 = vpop.f32.mrf.mxu1 }
  0xe7   : > { %v810_v43 = vpop.f32.mrf.mxu1  ;;  %436 = vmax.xlane.f32.xlu1 %v435_v40  ;;  %v804_v44 = vpop.f32.mrf.mxu0 }
 0x164   : > { %v428_v45 = vpop.xlane.xlu0 %427 }
 0x165   : > { %v438_v46 = vsub.f32 %v281_v25, %v428_v45 }
 0x167   : > { %v442_v47 = vmul.f32 1.442695, %v438_v46 }
 0x168   : > { %v431_v48 = vpop.xlane.xlu0 %430 }
 0x169   : > { %845 = vpow2.f32 %v442_v47  ;;  %v439_v49 = vsub.f32 %v327_v26, %v431_v48 }
 0x16b   : > { %v444_v50 = vmul.f32 1.442695, %v439_v49 }
 0x16c   : > { %v434_v51 = vpop.xlane.xlu1 %433 }
 0x16d   : > { %847 = vpow2.f32 %v444_v50  ;;  %v440_v52 = vsub.f32 %v373_v35, %v434_v51 }
 0x16f   : > { %v446_v53 = vmul.f32 1.442695, %v440_v52 }
 0x170   : > { %v437_v54 = vpop.xlane.xlu1 %436 }
 0x171   : > { %849 = vpow2.f32 %v446_v53  ;;  %v441_v55 = vsub.f32 %v419_v36, %v437_v54 }
 0x173   : > { %v448_v56 = vmul.f32 1.442695, %v441_v55 }
 0x175   : > { %851 = vpow2.f32 %v448_v56 }
 0x176   : > { %v846_v57 = vpop.eup %845 }
 0x177   : > { %v450_v58 = vsel %vm425_vm2, %v846_v57, 0.0 }
 0x178   : > { %451 = vadd.xlane.f32.xlu0 %v450_v58 }
 0x17a   : > { %v848_v59 = vpop.eup %847 }
 0x17b   : > { %v453_v60 = vsel %vm425_vm2, %v848_v59, 0.0 }
 0x17c   : > { %454 = vadd.xlane.f32.xlu1 %v453_v60 }
 0x17e   : > { %v850_v61 = vpop.eup %849 }
 0x17f   : > { %v456_v62 = vsel %vm425_vm2, %v850_v61, 0.0 }
 0x180   : > { %457 = vadd.xlane.f32.xlu0 %v456_v62 }
 0x182   : > { %v852_v63 = vpop.eup %851 }
 0x183   : > { %v459_v1 = vsel %vm425_vm2, %v852_v63, 0.0 }
 0x184   : > { %460 = vadd.xlane.f32.xlu1 %v459_v1 }
 0x201   : > { %v452_v14 = vpop.xlane.xlu0 %451 }
 0x202   : > { %853 = vrcp.f32 %v452_v14 }
 0x205   : > { %v455_v15 = vpop.xlane.xlu1 %454 }
 0x206   : > { %855 = vrcp.f32 %v455_v15 }
 0x209   : > { %v458_v16 = vpop.xlane.xlu0 %457 }
 0x20a   : > { %857 = vrcp.f32 %v458_v16 }
 0x20d   : > { %v461_v17 = vpop.xlane.xlu1 %460 }
 0x20e   : > { %859 = vrcp.f32 %v461_v17 }
 0x20f   : > { %v854_v18 = vpop.eup %853 }
 0x210   : > { %v466_v19 = vmul.f32 %v854_v18, %v846_v57 }
 0x212   : > { %v470_v20 = vpack.c.bf16 %v466_v19, %v466_v19 }
 0x213   : > { %v856_v21 = vpop.eup %855 }
 0x214   : > { %814 = vmatmul.mubr.msk.bf16.vlgmr.msra.gmra.mxu0 %vm474_vm4, %v470_v20  ;;  %v467_v22 = vmul.f32 %v856_v21, %v848_v59 }
 0x215   : > { %824 = vmatpush3.bf16.msra.mxu0 %v572_v10  ;;  %825 = vmatprep.mubr.msk.bf16.mxu0 %vm870_vm0, %v869_v0 }
 0x216   : > { %v471_v23 = vpack.c.bf16 %v467_v22, %v467_v22 }
 0x217   : > { %v858_v24 = vpop.eup %857 }
 0x218   : > { %820 = vmatmul.mubr.msk.bf16.vlgmr.msra.gmra.mxu1 %vm474_vm4, %v471_v23  ;;  %v468_v25 = vmul.f32 %v858_v24, %v850_v61 }
 0x219   : > { %830 = vmatpush3.bf16.msra.mxu1 %v618_v13  ;;  %831 = vmatprep.mubr.msk.bf16.mxu1 %vm870_vm0, %v869_v0 }
 0x21a   : > { %v472_v26 = vpack.c.bf16 %v468_v25, %v468_v25 }
 0x21b   : > { %v860_v27 = vpop.eup %859 }
 0x21c   : > { %826 = vmatmul.mubr.msk.bf16.vlgmr.msra.gmra.mxu0 %vm474_vm4, %v472_v26  ;;  %v469_v28 = vmul.f32 %v860_v27, %v852_v63 }
 0x21e   : > { %v473_v29 = vpack.c.bf16 %v469_v28, %v469_v28 }
 0x220   : > { %832 = vmatmul.mubr.msk.bf16.vlgmr.msra.gmra.mxu1 %vm474_vm4, %v473_v29 }
 0x2d4   : > { %v516_v30 = vpop.f32.mrf.mxu0 }
 0x2d5   : > { %661 = vst.msk [vmem:[%s210_s26] sm:$0x3] %vm660_vm5, %v516_v30 }
 0x2d6   : > { %v815_v31 = vpop.f32.mrf.mxu0 }
 0x2d8   : > { %v519_v32 = vpop.f32.mrf.mxu0  ;;  %v562_v33 = vpop.f32.mrf.mxu1 }
 0x2d9   : > { %662 = vst.msk [vmem:[%s210_s26 + $0x2] sm:$0x3] %vm660_vm5, %v562_v33 }
 0x2da   : > { %v816_v0 = vpop.f32.mrf.mxu0  ;;  %v821_v34 = vpop.f32.mrf.mxu1 }
 0x2dc   : > { %v565_v35 = vpop.f32.mrf.mxu1  ;;  %v608_v36 = vpop.f32.mrf.mxu0 }
 0x2dd   : > { %663 = vst.msk [vmem:[%s210_s26 + $0x4] sm:$0x3] %vm660_vm5, %v608_v36 }
 0x2de   : > { %v822_v37 = vpop.f32.mrf.mxu1  ;;  %v827_v38 = vpop.f32.mrf.mxu0 }
 0x2e0   : > { %v611_v39 = vpop.f32.mrf.mxu0  ;;  %v654_v40 = vpop.f32.mrf.mxu1 }
 0x2e1   : > { %664 = vst.msk [vmem:[%s210_s26 + $0x6] sm:$0x3] %vm660_vm5, %v654_v40 }
 0x2e2   : > { %v828_v41 = vpop.f32.mrf.mxu0  ;;  %v833_v42 = vpop.f32.mrf.mxu1 }
 0x2e4   : > { %v657_v43 = vpop.f32.mrf.mxu1 }
 0x2e6   : > { %v834_v44 = vpop.f32.mrf.mxu1 }
 0x2e7 PF: > { %s13_s12 = sadd.s32 1, %s867_s12  }
 0x2e8   : > { %p10_p4 = scmp.ge.s32.totalorder %s13_s12, 10  }
 0x2ea   :  { %12 = sbr.rel (!%p10_p4) target bundleno = 1 (0x1), region = 68 }

// kernel: decoder_only_transformer.23
= control target key start
LH: loop header
LB: loop body
LE: loop exit
PB: predicated region body
PF: predicated region fallthrough
CT: control target
= control target key end

     0   :  { %vm19_vm0 = vcmask 523264   ;;  %v157_v0 = vmov 0.0   ;;  %vm158_vm1 = vmmov 0   ;;  %s213_s1 = inlined_call_operand.vmem [shape: bf16[64,64], index: 1, kind: input, shape index: {}]   ;;  %s214_s0 = inlined_call_operand.vmem [shape: f32[16,64], index: 0, kind: input, shape index: {}]   ;;  %s215_s2 = inlined_call_operand.vmem [shape: f32[1,64], index: 2, kind: input, shape index: {}]   ;;  %s216_s3 = inlined_call_operand.vmem [shape: f32[16,64], index: 3, kind: output, shape index: {}]  }
   0x1   :  { %139 = vmatprep.subr.bf16.mxu0 %v157_v0  ;;  %v153_v1 = vld [vmem:[%s213_s1 + $0x18] sm:$0xff]   ;;  %147 = vmatprep.mubr.msk.bf16.mxu0 %vm158_vm1, %v157_v0  ;;  %20 = vst.msk [vmem:[#allocation2] sm:$0xff] %vm19_vm0, %v157_v0  ;;  %21 = vst.msk [vmem:[#allocation2 + $0x8] sm:$0xff] %vm19_vm0, %v157_v0  ;;  %v154_v2 = vld [vmem:[%s213_s1 + $0x10] sm:$0xff]  }
   0x2   :  { %140 = vmatpush3.bf16.msra.mxu0 %v153_v1  ;;  %v155_v3 = vld [vmem:[%s213_s1 + $0x8] sm:$0xff]   ;;  %v156_v4 = vld [vmem:[%s213_s1] sm:$0xff]  }
   0x3   :  { %141 = vmatprep.subr.bf16.mxu0 %v157_v0  ;;  %v24_v5 = vld [vmem:[%s214_s0] sm:$0xff]  ;;  %v25_v6 = vld [vmem:[%s214_s0 + $0x8] sm:$0xff] }
   0x4   :  { %v26_v7 = vpack.c.bf16 %v25_v6, %v24_v5  ;;  %v133_v16 = vld [vmem:[%s215_s2] ss:$0 sm:$0xff] }
   0x6   :  { %142 = vmatpush3.bf16.msra.mxu0 %v154_v2 }
   0x7   :  { %143 = vmatprep.subr.bf16.mxu0 %v157_v0 }
   0x8   :  { %v22_v8 = vld [vmem:[#allocation2] sm:$0xff]  ;;  %v23_v12 = vld [vmem:[#allocation2 + $0x8] sm:$0xff] }
   0xa   :  { %144 = vmatpush3.bf16.msra.mxu0 %v155_v3 }
   0xb   :  { %145 = vmatprep.subr.bf16.mxu0 %v157_v0 }
   0xe   :  { %146 = vmatpush3.bf16.msra.mxu0 %v156_v4 }
  0x11   :  { %148 = vmatmul.mubr.msk.bf16.vlgmr.msra.gmra.mxu0 %vm19_vm0, %v26_v7 }
  0xd1   :  { %v97_v9 = vpop.f32.mrf.mxu0 }
  0xd2   :  { %v104_v10 = vadd.f32 %v97_v9, %v22_v8 }
  0xd3   :  { %v149_v11 = vpop.f32.mrf.mxu0 }
  0xd4   :  { %106 = vst.msk [vmem:[#allocation2] sm:$0xff] %vm19_vm0, %v104_v10 }
  0xd5   :  { %v100_v13 = vpop.f32.mrf.mxu0 }
  0xd6   :  { %v105_v14 = vadd.f32 %v100_v13, %v23_v12 }
  0xd7   :  { %v150_v15 = vpop.f32.mrf.mxu0 }
  0xd8   :  { %107 = vst.msk [vmem:[#allocation2 + $0x8] sm:$0xff] %vm19_vm0, %v105_v14 }
  0xdb   :  { %v111_v17 = vld [vmem:[#allocation2] sm:$0xff] }
  0xdc   :  { %v120_v18 = vadd.f32 %v133_v16, %v111_v17 }
  0xde   :  { %122 = vst.msk [vmem:[%s216_s3] sm:$0xff] %vm19_vm0, %v120_v18 }
  0xdf   :  { %v112_v19 = vld [vmem:[#allocation2 + $0x8] sm:$0xff] }
  0xe0   :  { %v121_v20 = vadd.f32 %v133_v16, %v112_v19 }
  0xe2   :  { %123 = vst.msk [vmem:[%s216_s3 + $0x8] sm:$0xff] %vm19_vm0, %v121_v20 }

// kernel: decoder_only_transformer.24
= control target key start
LH: loop header
LB: loop body
LE: loop exit
PB: predicated region body
PF: predicated region fallthrough
CT: control target
= control target key end

     0   :  { %v156_v0 = vmov 0.0   ;;  %vm157_vm0 = vmmov 0   ;;  %vm58_vm1 = vcmask 523264   ;;  %s205_s1 = inlined_call_operand.vmem [shape: bf16[64,128], index: 1, kind: input, shape index: {}]   ;;  %s206_s0 = inlined_call_operand.vmem [shape: f32[16,64], index: 0, kind: input, shape index: {}]   ;;  %s207_s2 = inlined_call_operand.vmem [shape: f32[1,128], index: 2, kind: input, shape index: {}]   ;;  %s208_s3 = inlined_call_operand.vmem [shape: f32[16,128], index: 3, kind: output, shape index: {}]  }
   0x1   :  { %138 = vmatprep.subr.bf16.mxu0 %v156_v0  ;;  %v152_v1 = vld [vmem:[%s205_s1 + $0x18] sm:$0xff]   ;;  %146 = vmatprep.mubr.msk.bf16.mxu0 %vm157_vm0, %v156_v0  ;;  %v153_v2 = vld [vmem:[%s205_s1 + $0x10] sm:$0xff]   ;;  %v154_v3 = vld [vmem:[%s205_s1 + $0x8] sm:$0xff]  }
   0x2   :  { %139 = vmatpush3.bf16.msra.mxu0 %v152_v1  ;;  %v155_v4 = vld [vmem:[%s205_s1] sm:$0xff]   ;;  %v24_v6 = vld [vmem:[%s206_s0 + $0x8] sm:$0xff] }
   0x3   :  { %140 = vmatprep.subr.bf16.mxu0 %v156_v0  ;;  %v23_v5 = vld [vmem:[%s206_s0] sm:$0xff] }
   0x4   :  { %v25_v7 = vpack.c.bf16 %v24_v6, %v23_v5  ;;  %v132_v8 = vld [vmem:[%s207_s2] ss:$0 sm:$0xff] }
   0x6   :  { %141 = vmatpush3.bf16.msra.mxu0 %v153_v2 }
   0x7   :  { %142 = vmatprep.subr.bf16.mxu0 %v156_v0 }
   0xa   :  { %143 = vmatpush3.bf16.msra.mxu0 %v154_v3 }
   0xb   :  { %144 = vmatprep.subr.bf16.mxu0 %v156_v0 }
   0xe   :  { %145 = vmatpush3.bf16.msra.mxu0 %v155_v4 }
  0x11   :  { %147 = vmatmul.mubr.msk.bf16.vlgmr.msra.gmra.mxu0 %vm58_vm1, %v25_v7 }
  0xd1   :  { %v96_v9 = vpop.f32.mrf.mxu0 }
  0xd2   :  { %v119_v10 = vadd.f32 %v132_v8, %v96_v9 }
  0xd3   :  { %v148_v11 = vpop.f32.mrf.mxu0 }
  0xd4   :  { %121 = vst [vmem:[%s208_s3] sm:$0xff] %v119_v10 }
  0xd5   :  { %v99_v12 = vpop.f32.mrf.mxu0 }
  0xd6   :  { %v120_v13 = vadd.f32 %v132_v8, %v99_v12 }
  0xd7   :  { %v149_v14 = vpop.f32.mrf.mxu0 }
  0xd8   :  { %122 = vst [vmem:[%s208_s3 + $0x8] sm:$0xff] %v120_v13 }

// kernel: decoder_only_transformer.38
= control target key start
LH: loop header
LB: loop body
LE: loop exit
PB: predicated region body
PF: predicated region fallthrough
CT: control target
= control target key end

     0   :  { %vm16_vm0 = vcmask 523264   ;;  %s118_s0 = inlined_call_operand.vmem [shape: f32[16,64], index: 0, kind: input, shape index: {}]   ;;  %s119_s1 = inlined_call_operand.vmem [shape: f32[1,64], index: 1, kind: input, shape index: {}]   ;;  %s120_s2 = inlined_call_operand.vmem [shape: f32[1,64], index: 2, kind: input, shape index: {}]   ;;  %s121_s3 = inlined_call_operand.vmem [shape: f32[16,64], index: 3, kind: output, shape index: {}]  }
   0x1   :  { %v14_v0 = vld [vmem:[%s118_s0] sm:$0xff]  ;;  %v15_v1 = vld [vmem:[%s118_s0 + $0x8] sm:$0xff] }
   0x2   :  { %v17_v2 = vsel %vm16_vm0, %v14_v0, 0.0  ;;  %v20_v3 = vsel %vm16_vm0, %v15_v1, 0.0  ;;  %v68_v21 = vld [vmem:[%s119_s1] ss:$0 sm:$0xff] }
   0x3   :  { %18 = vadd.xlane.f32.xlu0 %v17_v2  ;;  %v69_v23 = vld [vmem:[%s120_s2] ss:$0 sm:$0xff] }
   0x7   :  { %21 = vadd.xlane.f32.xlu0 %v20_v3 }
  0x8c   :  { %v19_v4 = vpop.xlane.xlu0 %18 }
  0x8d   :  { %v24_v5 = vmul.f32 0.015625, %v19_v4 }
  0x8f   :  { %v26_v6 = vsub.f32 %v14_v0, %v24_v5 }
  0x90   :  { %v22_v7 = vpop.xlane.xlu0 %21 }
  0x91   :  { %v25_v8 = vmul.f32 0.015625, %v22_v7  ;;  %v28_v9 = vmul.f32 %v26_v6, %v26_v6 }
  0x93   :  { %v27_v10 = vsub.f32 %v15_v1, %v25_v8  ;;  %v30_v11 = vsel %vm16_vm0, %v28_v9, 0.0 }
  0x94   :  { %31 = vadd.xlane.f32.xlu1 %v30_v11 }
  0x95   :  { %v29_v12 = vmul.f32 %v27_v10, %v27_v10 }
  0x97   :  { %v33_v13 = vsel %vm16_vm0, %v29_v12, 0.0 }
  0x98   :  { %34 = vadd.xlane.f32.xlu1 %v33_v13 }
 0x11d   :  { %v32_v14 = vpop.xlane.xlu1 %31 }
 0x11e   :  { %v36_v15 = vmul.f32 0.015625, %v32_v14 }
 0x120   :  { %v38_v16 = vadd.f32 1e-05, %v36_v15 }
 0x121   :  { %v35_v17 = vpop.xlane.xlu1 %34 }
 0x122   :  { %70 = vrsqrt.f32 %v38_v16  ;;  %v37_v18 = vmul.f32 0.015625, %v35_v17 }
 0x124   :  { %v39_v19 = vadd.f32 1e-05, %v37_v18 }
 0x126   :  { %72 = vrsqrt.f32 %v39_v19 }
 0x12f   :  { %v71_v20 = vpop.eup %70 }
 0x130   :  { %v42_v22 = vmul.f32 %v71_v20, %v26_v6 }
 0x132   :  { %v51_v24 = vmul.f32 %v68_v21, %v42_v22 }
 0x133   :  { %v73_v25 = vpop.eup %72 }
 0x134   :  { %v60_v26 = vadd.f32 %v69_v23, %v51_v24  ;;  %v43_v27 = vmul.f32 %v73_v25, %v27_v10 }
 0x136   :  { %62 = vst.msk [vmem:[%s121_s3] sm:$0xff] %vm16_vm0, %v60_v26  ;;  %v52_v28 = vmul.f32 %v68_v21, %v43_v27 }
 0x138   :  { %v61_v29 = vadd.f32 %v69_v23, %v52_v28 }
 0x13a   :  { %63 = vst.msk [vmem:[%s121_s3 + $0x8] sm:$0xff] %vm16_vm0, %v61_v29 }

// kernel: decoder_only_transformer.28
= control target key start
LH: loop header
LB: loop body
LE: loop exit
PB: predicated region body
PF: predicated region fallthrough
CT: control target
= control target key end

     0   :  { %vm28_vm0 = vcmask 523264   ;;  %v344_v22 = vmov 0.0   ;;  %s471_s1 = inlined_call_operand.vmem [shape: bf16[256,64], index: 1, kind: input, shape index: {}]   ;;  %s472_s0 = inlined_call_operand.vmem [shape: f32[16,256], index: 0, kind: input, shape index: {}]   ;;  %s473_s2 = inlined_call_operand.vmem [shape: f32[1,64], index: 2, kind: input, shape index: {}]   ;;  %s474_s3 = inlined_call_operand.vmem [shape: f32[16,64], index: 3, kind: input, shape index: {}]   ;;  %s475_s4 = inlined_call_operand.vmem [shape: f32[1,64], index: 4, kind: input, shape index: {}]   ;;  %s476_s5 = inlined_call_operand.vmem [shape: f32[1,64], index: 5, kind: input, shape index: {}]   ;;  %s477_s6 = inlined_call_operand.vmem [shape: f32[16,64], index: 6, kind: output, shape index: {}]  }
   0x1   :  { %v324_v0 = vld [vmem:[%s471_s1 + $0x78] sm:$0xff]   ;;  %v326_v2 = vld [vmem:[%s471_s1 + $0x70] sm:$0xff]   ;;  %v328_v4 = vld [vmem:[%s471_s1 + $0x68] sm:$0xff]   ;;  %29 = vst.msk [vmem:[#allocation2] sm:$0xff] %vm28_vm0, %v344_v22 }
   0x2   :  { %v325_v1 = vld [vmem:[%s471_s1 + $0x38] sm:$0xff]   ;;  %301 = vmatprep.subr.bf16.mxu0 %v324_v0  ;;  %v327_v3 = vld [vmem:[%s471_s1 + $0x30] sm:$0xff]   ;;  %v329_v5 = vld [vmem:[%s471_s1 + $0x28] sm:$0xff]   ;;  %30 = vst.msk [vmem:[#allocation2 + $0x8] sm:$0xff] %vm28_vm0, %v344_v22 }
   0x3   :  { %302 = vmatpush3.bf16.msra.mxu0 %v325_v1  ;;  %v330_v6 = vld [vmem:[%s471_s1 + $0x60] sm:$0xff]   ;;  %v332_v8 = vld [vmem:[%s471_s1 + $0x58] sm:$0xff]   ;;  %v334_v10 = vld [vmem:[%s471_s1 + $0x50] sm:$0xff]  }
   0x4   :  { %303 = vmatprep.subr.bf16.mxu0 %v326_v2  ;;  %v331_v7 = vld [vmem:[%s471_s1 + $0x20] sm:$0xff]   ;;  %v333_v9 = vld [vmem:[%s471_s1 + $0x18] sm:$0xff]   ;;  %v34_v11 = vld [vmem:[%s472_s0 + $0x8] sm:$0xff] }
   0x5   :  { %v36_v12 = vld [vmem:[%s472_s0 + $0x18] sm:$0xff]  ;;  %v335_v14 = vld [vmem:[%s471_s1 + $0x10] sm:$0xff]   ;;  %v336_v15 = vld [vmem:[%s471_s1 + $0x48] sm:$0xff]  }
   0x6   :  { %v38_v13 = vpack.c.bf16 %v36_v12, %v34_v11  ;;  %v337_v16 = vld [vmem:[%s471_s1 + $0x8] sm:$0xff]   ;;  %v338_v17 = vld [vmem:[%s471_s1 + $0x40] sm:$0xff]   ;;  %v35_v20 = vld [vmem:[%s472_s0 + $0x10] sm:$0xff] }
   0x7   :  { %304 = vmatpush3.bf16.msra.mxu0 %v327_v3  ;;  %v339_v18 = vld [vmem:[%s471_s1] sm:$0xff]   ;;  %v228_v39 = vld [vmem:[%s474_s3 + $0x8] sm:$0xff] }
   0x8   :  { %305 = vmatprep.subr.bf16.mxu0 %v328_v4  ;;  %199 = vmatprep.mubr.bf16.mxu0 %v38_v13  ;;  %v33_v19 = vld [vmem:[%s472_s0] sm:$0xff] }
   0x9   :  { %v37_v21 = vpack.c.bf16 %v35_v20, %v33_v19  ;;  %v31_v24 = vld [vmem:[#allocation2] sm:$0xff]  ;;  %v32_v29 = vld [vmem:[#allocation2 + $0x8] sm:$0xff] }
   0xa   :  { %v298_v33 = vld [vmem:[%s473_s2] ss:$0 sm:$0xff] }
   0xb   :  { %306 = vmatpush3.bf16.msra.mxu0 %v329_v5  ;;  %v227_v35 = vld [vmem:[%s474_s3] sm:$0xff] }
   0xc   :  { %307 = vmatprep.subr.bf16.mxu0 %v330_v6  ;;  %v299_v61 = vld [vmem:[%s475_s4] ss:$0 sm:$0xff] }
   0xd   :  { %v300_v63 = vld [vmem:[%s476_s5] ss:$0 sm:$0xff] }
   0xf   :  { %308 = vmatpush3.bf16.msra.mxu0 %v331_v7 }
  0x10   :  { %309 = vmatprep.subr.bf16.mxu0 %v332_v8 }
  0x13   :  { %310 = vmatpush3.bf16.msra.mxu0 %v333_v9 }
  0x14   :  { %311 = vmatprep.subr.bf16.mxu0 %v334_v10 }
  0x17   :  { %312 = vmatpush3.bf16.msra.mxu0 %v335_v14 }
  0x18   :  { %313 = vmatprep.subr.bf16.mxu0 %v336_v15 }
  0x1b   :  { %314 = vmatpush3.bf16.msra.mxu0 %v337_v16 }
  0x1c   :  { %315 = vmatprep.subr.bf16.mxu0 %v338_v17 }
  0x1f   :  { %316 = vmatpush3.bf16.msra.mxu0 %v339_v18 }
  0x22   :  { %200 = vmatmul.mubr.bf16.vlgmr.msra.gmra.mxu0 %v37_v21 }
  0xe2   :  { %v317_v23 = vpop.f32.mrf.mxu0 }
  0xe4   :  { %v318_v25 = vpop.f32.mrf.mxu0 }
  0xe5   :  { %v319_v26 = vadd.f32 %v318_v25, %v317_v23 }
  0xe6   :  { %v320_v27 = vpop.f32.mrf.mxu0 }
  0xe7   :  { %v208_v28 = vadd.f32 %v319_v26, %v31_v24 }
  0xe8   :  { %v321_v30 = vpop.f32.mrf.mxu0 }
  0xe9   :  { %211 = vst.msk [vmem:[#allocation2] sm:$0xff] %vm28_vm0, %v208_v28  ;;  %v322_v31 = vadd.f32 %v321_v30, %v320_v27 }
  0xeb   :  { %v209_v32 = vadd.f32 %v322_v31, %v32_v29 }
  0xed   :  { %212 = vst.msk [vmem:[#allocation2 + $0x8] sm:$0xff] %vm28_vm0, %v209_v32 }
  0xf0   :  { %v216_v34 = vld [vmem:[#allocation2] sm:$0xff] }
  0xf1   :  { %v225_v36 = vadd.f32 %v298_v33, %v216_v34 }
  0xf3   :  { %v229_v37 = vadd.f32 %v227_v35, %v225_v36 }
  0xf4   :  { %v217_v38 = vld [vmem:[#allocation2 + $0x8] sm:$0xff] }
  0xf5   :  { %v231_v40 = vsel %vm28_vm0, %v229_v37, 0.0  ;;  %v226_v41 = vadd.f32 %v298_v33, %v217_v38 }
  0xf6   :  { %232 = vadd.xlane.f32.xlu0 %v231_v40 }
  0xf7   :  { %v230_v42 = vadd.f32 %v228_v39, %v226_v41 }
  0xf9   :  { %v234_v43 = vsel %vm28_vm0, %v230_v42, 0.0 }
  0xfa   :  { %235 = vadd.xlane.f32.xlu0 %v234_v43 }
 0x17f   :  { %v233_v44 = vpop.xlane.xlu0 %232 }
 0x180   :  { %v238_v45 = vmul.f32 0.015625, %v233_v44 }
 0x182   :  { %v240_v46 = vsub.f32 %v229_v37, %v238_v45 }
 0x183   :  { %v236_v47 = vpop.xlane.xlu0 %235 }
 0x184   :  { %v239_v48 = vmul.f32 0.015625, %v236_v47  ;;  %v242_v49 = vmul.f32 %v240_v46, %v240_v46 }
 0x186   :  { %v241_v50 = vsub.f32 %v230_v42, %v239_v48  ;;  %v244_v51 = vsel %vm28_vm0, %v242_v49, 0.0 }
 0x187   :  { %245 = vadd.xlane.f32.xlu1 %v244_v51 }
 0x188   :  { %v243_v52 = vmul.f32 %v241_v50, %v241_v50 }
 0x18a   :  { %v247_v53 = vsel %vm28_vm0, %v243_v52, 0.0 }
 0x18b   :  { %248 = vadd.xlane.f32.xlu1 %v247_v53 }
 0x210   :  { %v246_v54 = vpop.xlane.xlu1 %245 }
 0x211   :  { %v250_v55 = vmul.f32 0.015625, %v246_v54 }
 0x213   :  { %v252_v56 = vadd.f32 1e-05, %v250_v55 }
 0x214   :  { %v249_v57 = vpop.xlane.xlu1 %248 }
 0x215   :  { %340 = vrsqrt.f32 %v252_v56  ;;  %v251_v58 = vmul.f32 0.015625, %v249_v57 }
 0x217   :  { %v253_v59 = vadd.f32 1e-05, %v251_v58 }
 0x219   :  { %342 = vrsqrt.f32 %v253_v59 }
 0x222   :  { %v341_v60 = vpop.eup %340 }
 0x223   :  { %v256_v62 = vmul.f32 %v341_v60, %v240_v46 }
 0x225   :  { %v265_v0 = vmul.f32 %v299_v61, %v256_v62 }
 0x226   :  { %v343_v1 = vpop.eup %342 }
 0x227   :  { %v274_v2 = vadd.f32 %v300_v63, %v265_v0  ;;  %v257_v3 = vmul.f32 %v343_v1, %v241_v50 }
 0x229   :  { %276 = vst.msk [vmem:[%s477_s6] sm:$0xff] %vm28_vm0, %v274_v2  ;;  %v266_v4 = vmul.f32 %v299_v61, %v257_v3 }
 0x22b   :  { %v275_v5 = vadd.f32 %v300_v63, %v266_v4 }
 0x22d   :  { %277 = vst.msk [vmem:[%s477_s6 + $0x8] sm:$0xff] %vm28_vm0, %v275_v5 }

// kernel: decoder_only_transformer.27
= control target key start
LH: loop header
LB: loop body
LE: loop exit
PB: predicated region body
PF: predicated region fallthrough
CT: control target
= control target key end

     0   :  { %v310_v1 = vmov 0   ;;  %vm78_vm0 = vcmask 523264   ;;  %v142_v12 = vlaneseq  ;;  %s408_s1 = inlined_call_operand.vmem [shape: bf16[64,256], index: 1, kind: input, shape index: {}]   ;;  %s409_s0 = inlined_call_operand.vmem [shape: f32[16,64], index: 0, kind: input, shape index: {}]   ;;  %s410_s2 = inlined_call_operand.vmem [shape: f32[1,256], index: 2, kind: input, shape index: {}]   ;;  %s411_s3 = inlined_call_operand.vmem [shape: f32[16,256], index: 3, kind: output, shape index: {}]  }
   0x1   :  { %v282_v0 = vld [vmem:[%s408_s1 + $0x34] ss:$8 sps:$4 sm:$0xff]   ;;  %114 = vmatprep.mubr.bf16.mxu0 %v310_v1  ;;  %v284_v2 = vld [vmem:[%s408_s1 + $0x30] ss:$8 sps:$4 sm:$0xff]   ;;  %v285_v3 = vld [vmem:[%s408_s1 + $0x24] ss:$8 sps:$4 sm:$0xff]  }
   0x2   :  { %90 = vmatprep.subr.bf16.mxu0 %v282_v0  ;;  %v287_v4 = vld [vmem:[%s408_s1 + $0x20] ss:$8 sps:$4 sm:$0xff]   ;;  %v288_v5 = vld [vmem:[%s408_s1 + $0x14] ss:$8 sps:$4 sm:$0xff]   ;;  %v290_v6 = vld [vmem:[%s408_s1 + $0x10] ss:$8 sps:$4 sm:$0xff]  }
   0x3   :  { %91 = vmatpush1.bf16.msra.mxu0 %v284_v2  ;;  %v291_v7 = vld [vmem:[%s408_s1 + $0x4] ss:$8 sps:$4 sm:$0xff]   ;;  %v293_v8 = vld [vmem:[%s408_s1] ss:$8 sps:$4 sm:$0xff]   ;;  %v143_v13 = vshrl.u32 %v142_v12, 7 }
   0x4   :  { %92 = vmatprep.subr.bf16.mxu0 %v285_v3  ;;  %v27_v9 = vld [vmem:[%s409_s0] sm:$0xff]  ;;  %v28_v10 = vld [vmem:[%s409_s0 + $0x8] sm:$0xff] }
   0x5   :  { %v29_v11 = vpack.c.bf16 %v28_v10, %v27_v9  ;;  %v144_v14 = vsub.s32 0, %v143_v13  ;;  %v140_v15 = vld [vmem:[%s410_s2] sm:$0x3]  ;;  %v148_v16 = vsub.s32 1, %v143_v13 }
   0x7   :  { %93 = vmatpush1.bf16.msra.mxu0 %v287_v4  ;;  %v145_v17 = vrot.slane %v140_v15, %v144_v14  ;;  %v149_v18 = vrot.slane %v140_v15, %v148_v16 }
   0x8   :  { %94 = vmatprep.subr.bf16.mxu0 %v288_v5 }
   0xb   :  { %95 = vmatpush1.bf16.msra.mxu0 %v290_v6 }
   0xc   :  { %96 = vmatprep.subr.bf16.mxu0 %v291_v7 }
   0xf   :  { %97 = vmatpush1.bf16.msra.mxu0 %v293_v8 }
  0x12   :  { %280 = vmatmul.mubr.msk.bf16.vlgmr.msra.gmra.mxu0 %vm78_vm0, %v29_v11 }
  0xd2   :  { %v116_v19 = vpop.f32.mrf.mxu0 }
  0xd3   :  { %v364_v20 = vadd.f32 %v145_v17, %v116_v19 }
  0xd4   :  { %v118_v21 = vpop.f32.mrf.mxu0 }
  0xd5   :  { %v367_v22 = vmul.f32 0.70710677, %v364_v20  ;;  %v369_v23 = vadd.f32 %v149_v18, %v118_v21 }
  0xd6   :  { %v120_v24 = vpop.f32.mrf.mxu0 }
  0xd7   :  { %v164_v25 = vand.u32 2147483647, %v367_v22  ;;  %v373_v26 = vmul.f32 0.70710677, %v369_v23  ;;  %v375_v27 = vadd.f32 %v145_v17, %v120_v24  ;;  %vm244_vm1 = vcmp.lt.f32.partialorder %v367_v22, 0.0 }
  0xd8   :  { %v122_v28 = vpop.f32.mrf.mxu0 }
  0xd9   :  { %v168_v29 = vmul.f32 0.3275911, %v164_v25  ;;  %v165_v30 = vand.u32 2147483647, %v373_v26  ;;  %v379_v31 = vmul.f32 0.70710677, %v375_v27  ;;  %v381_v32 = vadd.f32 %v149_v18, %v122_v28 }
  0xda   :  { %v220_v43 = vsub.f32 0.0, %v164_v25  ;;  %vm245_vm2 = vcmp.lt.f32.partialorder %v373_v26, 0.0 }
  0xdb   :  { %v172_v33 = vadd.f32 1.0, %v168_v29  ;;  %v169_v34 = vmul.f32 0.3275911, %v165_v30  ;;  %v166_v35 = vand.u32 2147483647, %v379_v31  ;;  %v221_v44 = vsub.f32 0.0, %v165_v30 }
  0xdc   :  { %v385_v36 = vmul.f32 0.70710677, %v381_v32  ;;  %v224_v45 = vmul.f32 %v220_v43, %v164_v25  ;;  %vm246_vm3 = vcmp.lt.f32.partialorder %v379_v31, 0.0  ;;  %v159_v31 = vmul.f32 0.5, %v381_v32 }
  0xdd   :  { %294 = vrcp.f32 %v172_v33  ;;  %v173_v37 = vadd.f32 1.0, %v169_v34  ;;  %v170_v38 = vmul.f32 0.3275911, %v166_v35  ;;  %v222_v46 = vsub.f32 0.0, %v166_v35 }
  0xde   :  { %v167_v39 = vand.u32 2147483647, %v385_v36  ;;  %v225_v48 = vmul.f32 %v221_v44, %v165_v30  ;;  %v228_v50 = vmul.f32 1.442695, %v224_v45  ;;  %vm247_vm4 = vcmp.lt.f32.partialorder %v385_v36, 0.0 }
  0xdf   :  { %296 = vrcp.f32 %v173_v37  ;;  %v174_v40 = vadd.f32 1.0, %v170_v38  ;;  %v226_v52 = vmul.f32 %v222_v46, %v166_v35 }
  0xe0   :  { %v171_v41 = vmul.f32 0.3275911, %v167_v39  ;;  %v223_v51 = vsub.f32 0.0, %v167_v39  ;;  %v230_v56 = vmul.f32 1.442695, %v225_v48 }
  0xe1   :  { %298 = vrcp.f32 %v174_v40  ;;  %v232_v62 = vmul.f32 1.442695, %v226_v52 }
  0xe2   :  { %v175_v42 = vadd.f32 1.0, %v171_v41  ;;  %v227_v59 = vmul.f32 %v223_v51, %v167_v39 }
  0xe4   :  { %300 = vrcp.f32 %v175_v42  ;;  %v234_v5 = vmul.f32 1.442695, %v227_v59 }
  0xe5   :  { %302 = vpow2.f32 %v228_v50  ;;  %v156_v50 = vmul.f32 0.5, %v364_v20 }
  0xe6   :  { %304 = vpow2.f32 %v230_v56 }
  0xe7   :  { %306 = vpow2.f32 %v232_v62 }
  0xe8   :  { %308 = vpow2.f32 %v234_v5 }
  0xea   :  { %v295_v47 = vpop.eup %294 }
  0xeb   :  { %v184_v49 = vmul.f32 1.0614054, %v295_v47 }
  0xec   :  { %v297_v53 = vpop.eup %296 }
  0xed   :  { %v188_v54 = vadd.f32 -1.4531521, %v184_v49  ;;  %v185_v55 = vmul.f32 1.0614054, %v297_v53 }
  0xee   :  { %v299_v57 = vpop.eup %298 }
  0xef   :  { %v192_v58 = vmul.f32 %v295_v47, %v188_v54  ;;  %v189_v60 = vadd.f32 -1.4531521, %v185_v55  ;;  %v186_v61 = vmul.f32 1.0614054, %v299_v57 }
  0xf1   :  { %v196_v63 = vadd.f32 1.4214138, %v192_v58  ;;  %v301_v0 = vpop.eup %300  ;;  %v193_v1 = vmul.f32 %v297_v53, %v189_v60  ;;  %v190_v2 = vadd.f32 -1.4531521, %v186_v61  ;;  %v157_v58 = vmul.f32 0.5, %v369_v23 }
  0xf2   :  { %v187_v4 = vmul.f32 1.0614054, %v301_v0  ;;  %v303_v25 = vpop.eup %302  ;;  %v158_v61 = vmul.f32 0.5, %v375_v27 }
  0xf3   :  { %v200_v3 = vmul.f32 %v295_v47, %v196_v63  ;;  %v197_v6 = vadd.f32 1.4214138, %v193_v1  ;;  %v194_v7 = vmul.f32 %v299_v57, %v190_v2  ;;  %v305_v37 = vpop.eup %304 }
  0xf4   :  { %v191_v9 = vadd.f32 -1.4531521, %v187_v4  ;;  %v307_v42 = vpop.eup %306 }
  0xf5   :  { %v204_v8 = vadd.f32 -0.28449672, %v200_v3  ;;  %v201_v10 = vmul.f32 %v297_v53, %v197_v6  ;;  %v198_v11 = vadd.f32 1.4214138, %v194_v7  ;;  %v309_v49 = vpop.eup %308 }
  0xf6   :  { %v195_v13 = vmul.f32 %v301_v0, %v191_v9 }
  0xf7   :  { %v208_v12 = vmul.f32 %v295_v47, %v204_v8  ;;  %v205_v14 = vadd.f32 -0.28449672, %v201_v10  ;;  %v202_v15 = vmul.f32 %v299_v57, %v198_v11 }
  0xf8   :  { %v199_v17 = vadd.f32 1.4214138, %v195_v13 }
  0xf9   :  { %v212_v16 = vadd.f32 0.2548296, %v208_v12  ;;  %v209_v18 = vmul.f32 %v297_v53, %v205_v14  ;;  %v206_v19 = vadd.f32 -0.28449672, %v202_v15 }
  0xfa   :  { %v203_v24 = vmul.f32 %v301_v0, %v199_v17 }
  0xfb   :  { %v216_v21 = vmul.f32 %v295_v47, %v212_v16  ;;  %v213_v28 = vadd.f32 0.2548296, %v209_v18  ;;  %v210_v29 = vmul.f32 %v299_v57, %v206_v19 }
  0xfc   :  { %v207_v33 = vadd.f32 -0.28449672, %v203_v24 }
  0xfd   :  { %v236_v30 = vmul.f32 %v303_v25, %v216_v21  ;;  %v217_v34 = vmul.f32 %v297_v53, %v213_v28  ;;  %v214_v35 = vadd.f32 0.2548296, %v210_v29 }
  0xfe   :  { %v211_v39 = vmul.f32 %v301_v0, %v207_v33 }
  0xff   :  { %v240_v38 = vsub.f32 1.0, %v236_v30  ;;  %v237_v40 = vmul.f32 %v305_v37, %v217_v34  ;;  %v218_v41 = vmul.f32 %v299_v57, %v214_v35 }
 0x100   :  { %v215_v44 = vadd.f32 0.2548296, %v211_v39 }
 0x101   :  { %v248_v43 = vsub.f32 0.0, %v240_v38  ;;  %v241_v45 = vsub.f32 1.0, %v237_v40  ;;  %v238_v46 = vmul.f32 %v307_v42, %v218_v41 }
 0x102   :  { %v219_v48 = vmul.f32 %v301_v0, %v215_v44 }
 0x103   :  { %v252_v47 = vsel %vm244_vm1, %v248_v43, %v240_v38  ;;  %v249_v52 = vsub.f32 0.0, %v241_v45  ;;  %v242_v53 = vsub.f32 1.0, %v238_v46 }
 0x104   :  { %v256_v51 = vadd.f32 1.0, %v252_v47  ;;  %v239_v54 = vmul.f32 %v309_v49, %v219_v48 }
 0x105   :  { %v253_v56 = vsel %vm245_vm2, %v249_v52, %v241_v45  ;;  %v250_v57 = vsub.f32 0.0, %v242_v53 }
 0x106   :  { %v260_v55 = vmul.f32 %v256_v51, %v156_v50  ;;  %v257_v59 = vadd.f32 1.0, %v253_v56  ;;  %v243_v22 = vsub.f32 1.0, %v239_v54 }
 0x107   :  { %v254_v20 = vsel %vm246_vm3, %v250_v57, %v242_v53 }
 0x108   :  { %264 = vst [vmem:[%s411_s3] sm:$0xff] %v260_v55  ;;  %v261_v60 = vmul.f32 %v257_v59, %v157_v58  ;;  %v258_v62 = vadd.f32 1.0, %v254_v20  ;;  %v251_v26 = vsub.f32 0.0, %v243_v22 }
 0x10a   :  { %265 = vst [vmem:[%s411_s3 + $0x8] sm:$0xff] %v261_v60  ;;  %v262_v23 = vmul.f32 %v258_v62, %v158_v61  ;;  %v255_v63 = vsel %vm247_vm4, %v251_v26, %v243_v22 }
 0x10b   :  { %v259_v0 = vadd.f32 1.0, %v255_v63 }
 0x10c   :  { %266 = vst [vmem:[%s411_s3 + $0x10] sm:$0xff] %v262_v23 }
 0x10d   :  { %v263_v1 = vmul.f32 %v259_v0, %v159_v31 }
 0x10f   :  { %267 = vst [vmem:[%s411_s3 + $0x18] sm:$0xff] %v263_v1 }

// kernel: decoder_only_transformer.39
= control target key start
LH: loop header
LB: loop body
LE: loop exit
PB: predicated region body
PF: predicated region fallthrough
CT: control target
= control target key end

     0   :  { %v249_v1 = vmov 0.0   ;;  %vm80_vm0 = vcmask 523264   ;;  %s311_s0 = inlined_call_operand.vmem [shape: f32[16,64], index: 0, kind: input, shape index: {}]   ;;  %s312_s1 = inlined_call_operand.vmem [shape: bf16[128,64], index: 1, kind: input, shape index: {}]   ;;  %s313_s2 = inlined_call_operand.hbm [shape: f32[16,128], index: 2, kind: output, shape index: {}]  }
   0x1   :  { %v219_v0 = vld [vmem:[%s312_s1 + $0x38] sm:$0xff]   ;;  %194 = vmatprep.subr.bf16.mxu0 %v249_v1  ;;  %v220_v3 = vld [vmem:[%s312_s1 + $0x30] sm:$0xff]  }
   0x2   :  { %v106_v2 = vsel %vm80_vm0, %v219_v0, 0  ;;  %v103_v4 = vsel %vm80_vm0, %v220_v3, 0 }
   0x3   :  { %195 = vmatpush3.bf16.xpose.msra.mxu0 %v106_v2 }
   0x4   :  { %196 = vmatprep.subr.bf16.mxu0 %v249_v1 }
   0x5   :  { %7 = vsyncpa [#allocation4], 0  ;;  %vm250_vm1 = vmmov 0   ;;  %v221_v5 = vld [vmem:[%s312_s1 + $0x28] sm:$0xff]   ;;  %v222_v7 = vld [vmem:[%s312_s1 + $0x20] sm:$0xff]   ;;  %s251_s29 = smov [#allocation3]  }
   0x6   :  { %210 = vmatprep.mubr.msk.bf16.mxu0 %vm250_vm1, %v249_v1  ;;  %v100_v6 = vsel %vm80_vm0, %v221_v5, 0  ;;  %v97_v8 = vsel %vm80_vm0, %v222_v7, 0  ;;  %v223_v9 = vld [vmem:[%s312_s1 + $0x18] sm:$0xff]   ;;  %v224_v11 = vld [vmem:[%s312_s1 + $0x10] sm:$0xff]   ;;  %v225_v13 = vld [vmem:[%s312_s1 + $0x8] sm:$0xff]   ;;  %s165_s30 = sshll.u32 %s251_s29, 4  ;;  %s166_s30 = int_to_ptr.vmem [resolvable:$true] %s165_s30 }
   0x7   :  { %v94_v10 = vsel %vm80_vm0, %v223_v9, 0  ;;  %v91_v12 = vsel %vm80_vm0, %v224_v11, 0  ;;  %v88_v14 = vsel %vm80_vm0, %v225_v13, 0  ;;  %v226_v15 = vld [vmem:[%s312_s1] sm:$0xff]   ;;  %v22_v18 = vld [vmem:[%s311_s0 + $0x8] sm:$0xff]  ;;  %s227_s1 = scalar_lea.vmem %s166_s30, 256  ;;  %p232_p1 = scmp.lt.s32.totalorder %s166_s30, %s166_s30 }
   0x8   :  { %v85_v16 = vsel %vm80_vm0, %v226_v15, 0  ;;  %v21_v17 = vld [vmem:[%s311_s0] sm:$0xff]  ;;  %p228_p0 = scmp.ne.s32.totalorder %s166_s30, %s227_s1  ;;  %p233_p2 = scmp.lt.s32.totalorder %s227_s1, %s227_s1 }
   0x9   :  { %v23_v19 = vpack.c.bf16 %v22_v18, %v21_v17 }
   0xa   :  { %p234_p3 = por %p233_p2, %p232_p1 }
   0xb   :  { %197 = vmatpush3.bf16.xpose.msra.mxu0 %v103_v4 }
   0xc   :  { %198 = vmatprep.subr.bf16.mxu0 %v249_v1  ;;  %p235_p4 = pnand %p234_p3, %p228_p0 }
  0x13   :  { %199 = vmatpush3.bf16.xpose.msra.mxu0 %v100_v6 }
  0x14   :  { %200 = vmatprep.subr.bf16.mxu0 %v249_v1 }
  0x1b   :  { %201 = vmatpush3.bf16.xpose.msra.mxu0 %v97_v8 }
  0x1c   :  { %202 = vmatprep.subr.bf16.mxu0 %v249_v1 }
  0x23   :  { %203 = vmatpush3.bf16.xpose.msra.mxu0 %v94_v10 }
  0x24   :  { %204 = vmatprep.subr.bf16.mxu0 %v249_v1 }
  0x2b   :  { %205 = vmatpush3.bf16.xpose.msra.mxu0 %v91_v12 }
  0x2c   :  { %206 = vmatprep.subr.bf16.mxu0 %v249_v1 }
  0x33   :  { %207 = vmatpush3.bf16.xpose.msra.mxu0 %v88_v14 }
  0x34   :  { %208 = vmatprep.subr.bf16.mxu0 %v249_v1 }
  0x3b   :  { %209 = vmatpush3.bf16.xpose.msra.mxu0 %v85_v16 }
  0x42   :  { %211 = vmatmul.mubr.msk.bf16.vlgmr.msra.gmra.mxu0 %vm80_vm0, %v23_v19 }
 0x102   :  { %v142_v20 = vpop.f32.mrf.mxu0 }
 0x103   :  { %158 = vst [vmem:[#allocation3] sm:$0xff] %v142_v20 }
 0x104   :  { %v212_v21 = vpop.f32.mrf.mxu0 }
 0x106   :  { %v145_v22 = vpop.f32.mrf.mxu0 }
 0x107   :  { %159 = vst [vmem:[#allocation3 + $0x8] sm:$0xff] %v145_v22 }
 0x108   :  { %v213_v23 = vpop.f32.mrf.mxu0 }
 0x109   :  { %238 = shalt.err (!%p235_p4)
}
 0x10a   :  { %s252_s0 = smov 128   ;;  %s253_s3 = smov 8  }
 0x10b   :  { %171 = dma.vmem_to_hbm [thread:$0]  %s166_s30, 256, %s313_s2, [#allocation4], %s252_s0, %s252_s0, %s253_s3  }
 0x10c   :  { %247 = dma.done.wait [#allocation4], 256  }
 0x10d   :  { %248 = vsyncadd [#allocation4], 4294967040 }
 0x10e   :  { %175 = vsyncpa [#allocation4], 1 }

</bundles_post_ra>
